<compile_context>
chip_gen: v5e
topology: v5e:2x2
jax: 0.10.0
libtpu: 0.0.40
codegen_flags: <defaults>
</compile_context>

<pallas_src>
import functools

import jax
import jax.numpy as jnp
from jax import lax
from jax.experimental import pallas as pl
from jax.experimental.pallas import tpu as pltpu

N_HEADS = 4
BN_EPS = 1e-5


def _sa_m_kernel(x_ref, wbig_ref, wt_ref, bt_ref, gamma_ref, beta_ref, out_ref,
                 *, bs, C, P, mxu_dtype):
    """Full forward for one small batch, lane-flattened.

    x_ref:     (C, L)   input, L = bs*P, column index = b*P + p   (f32)
    wbig_ref:  (5C, C)  [wv; wk_0^T wq_0; ...; wk_3^T wq_3]        (mxu_dtype)
    wt_ref:    (C, C)   trans_conv weight                          (mxu_dtype)
    bt_ref:    (C, 1)   trans_conv bias                            (f32)
    gamma/beta:(C, 1)   BatchNorm affine params                    (f32)
    out_ref:   (C, L)   output                                     (f32)
    """
    d = C // N_HEADS
    L = bs * P

    X = x_ref[...]                                   # (C, L) f32
    Xc = X.astype(mxu_dtype)

    # Fused projection: one MXU matmul gives V = wv @ X and S_h = M_h @ X for every head.
    proj = jnp.dot(wbig_ref[...], Xc, preferred_element_type=jnp.float32)   # (5C, L) f32
    V = proj[:C, :]                                  # (C, L)
    S = proj[C:, :]                                  # (4C, L)

    batch_blocks = []
    for b in range(bs):                              # static unroll: bs is tiny
        xb = X[:, b * P:(b + 1) * P]                 # (C, P) f32
        xbT_c = xb.T.astype(mxu_dtype)               # (P, C) one transpose per batch
        head_blocks = []
        for h in range(N_HEADS):
            s_bh = S[h * C:(h + 1) * C, b * P:(b + 1) * P]          # (C, P) f32 (M_h @ x_b)
            # xy^T = x_b^T @ (M_h @ x_b): K = C contraction, no transposed-LHS dot.
            xyT = jnp.dot(xbT_c, s_bh.astype(mxu_dtype),
                          preferred_element_type=jnp.float32)        # (P, P) f32
            vh = V[h * d:(h + 1) * d, b * P:(b + 1) * P]             # (d, P) f32 slice
            ah = jnp.dot(vh.astype(mxu_dtype), xyT.astype(mxu_dtype),
                         preferred_element_type=jnp.float32)         # (d, P) f32
            head_blocks.append(ah)
        batch_blocks.append(jnp.concatenate(head_blocks, axis=0))    # (C, P) stays in vregs
    A = jnp.concatenate(batch_blocks, axis=1)                        # (C, L)

    # trans_conv over the whole lane-flattened batch (single matmul) + bias.
    T = jnp.dot(wt_ref[...], A.astype(mxu_dtype),
                preferred_element_type=jnp.float32) + bt_ref[...]    # (C, L)

    # Residual branch + BatchNorm1d (training mode, biased variance, two-pass) + ReLU + skip.
    Y = T - X
    mean = jnp.sum(Y, axis=1, keepdims=True) * (1.0 / L)             # (C, 1)
    cent = Y - mean
    var = jnp.sum(cent * cent, axis=1, keepdims=True) * (1.0 / L)    # (C, 1)
    inv = lax.rsqrt(var + BN_EPS)
    Z = gamma_ref[...] * cent * inv + beta_ref[...]
    out_ref[...] = X + jnp.maximum(Z, 0.0)


def sa_m_layer(x, wq, wk, wv, wt, bt, gamma, beta, *, mxu_dtype=jnp.bfloat16):
    bs, C, P = x.shape
    assert C % N_HEADS == 0
    # trans_conv(channels, channels, 1) applied to a (bs, p, channels) tensor requires p == channels
    assert P == C, "SA_M_Layer only type-checks in PyTorch when p == channels"
    d = C // N_HEADS
    L = bs * P

    # Weight-only fold (outside the kernel): M_h = wk_h^T @ wq_h.
    Ms = jnp.concatenate(
        [wk[h * d:(h + 1) * d, :].T @ wq[h * d:(h + 1) * d, :] for h in range(N_HEADS)],
        axis=0)                                       # (4C, C)
    Wbig = jnp.concatenate([wv, Ms], axis=0)          # (5C, C) fused projection weight

    # Lane-dense layout: (bs, C, P) -> (C, bs*P). Layout plumbing lives in the wrapper.
    x_flat = x.transpose(1, 0, 2).reshape(C, L)

    vmem = pl.BlockSpec(memory_space=pltpu.MemorySpace.VMEM)
    kernel = functools.partial(_sa_m_kernel, bs=bs, C=C, P=P, mxu_dtype=mxu_dtype)
    out_flat = pl.pallas_call(
        kernel,
        out_shape=jax.ShapeDtypeStruct((C, L), jnp.float32),
        in_specs=[vmem] * 6,
        out_specs=vmem,
    )(x_flat, Wbig.astype(mxu_dtype), wt.astype(mxu_dtype),
      bt.reshape(C, 1), gamma.reshape(C, 1), beta.reshape(C, 1))

    return out_flat.reshape(C, bs, P).transpose(1, 0, 2)


def sa_m_reference(x, wq, wk, wv, wt, bt, gamma, beta):
    """Pure-JAX f32 transcription of the PyTorch forward (for verification)."""
    bs, C, P = x.shape
    q = jnp.einsum('oc,bcp->bop', wq, x)
    k = jnp.einsum('oc,bcp->bop', wk, x)
    v = jnp.einsum('oc,bcp->bop', wv, x)
    xq = q.reshape(bs, 4, -1, P).transpose(0, 1, 3, 2)
    xk = k.reshape(bs, 4, -1, P)
    xy = jnp.matmul(xq, xk)
    xv = v.reshape(bs, 4, -1, P).transpose(0, 1, 3, 2)
    xyz = jnp.matmul(xy, xv)
    xyz = xyz.transpose(0, 1, 3, 2).reshape(bs, P, -1)           # (bs, P, C) == (bs, C, P) data
    t = jnp.einsum('oc,bcl->bol', wt, xyz) + bt[None, :, None]   # trans_conv
    y = t - x
    mean = jnp.mean(y, axis=(0, 2), keepdims=True)
    var = jnp.mean((y - mean) ** 2, axis=(0, 2), keepdims=True)
    z = gamma[None, :, None] * (y - mean) * lax.rsqrt(var + BN_EPS) + beta[None, :, None]
    return x + jnp.maximum(z, 0.0)


if __name__ == "__main__":
    bs, C = 4, 32          # bs*P == 128 -> fully lane-dense kernel layout
    P = C                  # module requires p == channels

    key = jax.random.PRNGKey(0)
    k_x, k_q, k_k, k_v, k_t, k_b = jax.random.split(key, 6)

    bound = 1.0 / (C ** 0.5)  # PyTorch Conv1d default kaiming-uniform bound for kernel_size=1
    wq = jax.random.uniform(k_q, (C, C), jnp.float32, -bound, bound)
    wk = jax.random.uniform(k_k, (C, C), jnp.float32, -bound, bound)
    wv = jax.random.uniform(k_v, (C, C), jnp.float32, -bound, bound)
    wt = jax.random.uniform(k_t, (C, C), jnp.float32, -bound, bound)
    bt = jax.random.uniform(k_b, (C,), jnp.float32, -bound, bound)
    gamma = jnp.ones((C,), jnp.float32)
    beta = jnp.zeros((C,), jnp.float32)

    x = jax.random.normal(k_x, (bs, C, P), jnp.float32)

    ref = jax.block_until_ready(sa_m_reference(x, wq, wk, wv, wt, bt, gamma, beta))

    # f32 MXU operands: should match the f32 reference tightly.
    out_f32 = jax.block_until_ready(
        sa_m_layer(x, wq, wk, wv, wt, bt, gamma, beta, mxu_dtype=jnp.float32))
    assert out_f32.shape == (bs, C, P)
    assert jnp.allclose(out_f32, ref, rtol=1e-4, atol=1e-4), (
        f"f32 path: max abs diff {float(jnp.max(jnp.abs(out_f32 - ref)))}")

    # bf16 MXU operands (v6e/v7x fast path), f32 accumulation + f32 epilogue: relaxed tolerance.
    out_bf16 = jax.block_until_ready(
        sa_m_layer(x, wq, wk, wv, wt, bt, gamma, beta, mxu_dtype=jnp.bfloat16))
    assert out_bf16.shape == (bs, C, P)
    assert jnp.allclose(out_bf16, ref, rtol=5e-2, atol=1e-1), (
        f"bf16 path: max abs diff {float(jnp.max(jnp.abs(out_bf16 - ref)))}")

    print("KERNEL_OK")
</pallas_src>

<mosaic_0001>
module attributes {stable_mosaic.version = 11 : i64} {
  func.func @_sa_m_kernel(%arg0: memref<32x128xf32, #tpu.memory_space<vmem>>, %arg1: memref<160x32xf32, #tpu.memory_space<vmem>>, %arg2: memref<32x32xf32, #tpu.memory_space<vmem>>, %arg3: memref<32x1xf32, #tpu.memory_space<vmem>>, %arg4: memref<32x1xf32, #tpu.memory_space<vmem>>, %arg5: memref<32x1xf32, #tpu.memory_space<vmem>>, %arg6: memref<32x128xf32, #tpu.memory_space<vmem>>) attributes {dimension_semantics = [], scalar_prefetch = 0 : i64, scratch_operands = 0 : i64, tpu.core_type = #tpu.core_type<tc>} {
    %c0 = arith.constant 0 : index
    %c0_0 = arith.constant 0 : index
    %0 = vector.load %arg0[%c0, %c0_0] : memref<32x128xf32, #tpu.memory_space<vmem>>, vector<32x128xf32>
    %c0_1 = arith.constant 0 : index
    %c0_2 = arith.constant 0 : index
    %1 = vector.load %arg1[%c0_1, %c0_2] : memref<160x32xf32, #tpu.memory_space<vmem>>, vector<160x32xf32>
    %cst = arith.constant dense<0.000000e+00> : vector<160x128xf32>
    %2 = tpu.matmul %1, %0, %cst {dimension_numbers = #tpu.dot_dimension_numbers<[1], [0], [0], [1], [0, 0, 1, 1], [], []>} : vector<160x32xf32>, vector<32x128xf32>, vector<160x128xf32> -> vector<160x128xf32>
    %3 = vector.extract_strided_slice %2 {offsets = [0, 0], sizes = [32, 128], strides = [1, 1]} : vector<160x128xf32> to vector<32x128xf32>
    %4 = vector.extract_strided_slice %2 {offsets = [32, 0], sizes = [128, 128], strides = [1, 1]} : vector<160x128xf32> to vector<128x128xf32>
    %5 = vector.extract_strided_slice %0 {offsets = [0, 0], sizes = [32, 32], strides = [1, 1]} : vector<32x128xf32> to vector<32x32xf32>
    %6 = tpu.transpose %5, [1, 0] : vector<32x32xf32> -> vector<32x32xf32>
    %7 = vector.extract_strided_slice %4 {offsets = [0, 0], sizes = [32, 32], strides = [1, 1]} : vector<128x128xf32> to vector<32x32xf32>
    %cst_3 = arith.constant dense<0.000000e+00> : vector<32x32xf32>
    %8 = tpu.matmul %6, %7, %cst_3 {dimension_numbers = #tpu.dot_dimension_numbers<[1], [0], [0], [1], [0, 0, 1, 1], [], []>} : vector<32x32xf32>, vector<32x32xf32>, vector<32x32xf32> -> vector<32x32xf32>
    %9 = vector.extract_strided_slice %3 {offsets = [0, 0], sizes = [8, 32], strides = [1, 1]} : vector<32x128xf32> to vector<8x32xf32>
    %cst_4 = arith.constant dense<0.000000e+00> : vector<8x32xf32>
    %10 = tpu.matmul %9, %8, %cst_4 {dimension_numbers = #tpu.dot_dimension_numbers<[1], [0], [0], [1], [0, 0, 1, 1], [], []>} : vector<8x32xf32>, vector<32x32xf32>, vector<8x32xf32> -> vector<8x32xf32>
    %11 = vector.extract_strided_slice %4 {offsets = [32, 0], sizes = [32, 32], strides = [1, 1]} : vector<128x128xf32> to vector<32x32xf32>
    %cst_5 = arith.constant dense<0.000000e+00> : vector<32x32xf32>
    %12 = tpu.matmul %6, %11, %cst_5 {dimension_numbers = #tpu.dot_dimension_numbers<[1], [0], [0], [1], [0, 0, 1, 1], [], []>} : vector<32x32xf32>, vector<32x32xf32>, vector<32x32xf32> -> vector<32x32xf32>
    %13 = vector.extract_strided_slice %3 {offsets = [8, 0], sizes = [8, 32], strides = [1, 1]} : vector<32x128xf32> to vector<8x32xf32>
    %cst_6 = arith.constant dense<0.000000e+00> : vector<8x32xf32>
    %14 = tpu.matmul %13, %12, %cst_6 {dimension_numbers = #tpu.dot_dimension_numbers<[1], [0], [0], [1], [0, 0, 1, 1], [], []>} : vector<8x32xf32>, vector<32x32xf32>, vector<8x32xf32> -> vector<8x32xf32>
    %15 = vector.extract_strided_slice %4 {offsets = [64, 0], sizes = [32, 32], strides = [1, 1]} : vector<128x128xf32> to vector<32x32xf32>
    %cst_7 = arith.constant dense<0.000000e+00> : vector<32x32xf32>
    %16 = tpu.matmul %6, %15, %cst_7 {dimension_numbers = #tpu.dot_dimension_numbers<[1], [0], [0], [1], [0, 0, 1, 1], [], []>} : vector<32x32xf32>, vector<32x32xf32>, vector<32x32xf32> -> vector<32x32xf32>
    %17 = vector.extract_strided_slice %3 {offsets = [16, 0], sizes = [8, 32], strides = [1, 1]} : vector<32x128xf32> to vector<8x32xf32>
    %cst_8 = arith.constant dense<0.000000e+00> : vector<8x32xf32>
    %18 = tpu.matmul %17, %16, %cst_8 {dimension_numbers = #tpu.dot_dimension_numbers<[1], [0], [0], [1], [0, 0, 1, 1], [], []>} : vector<8x32xf32>, vector<32x32xf32>, vector<8x32xf32> -> vector<8x32xf32>
    %19 = vector.extract_strided_slice %4 {offsets = [96, 0], sizes = [32, 32], strides = [1, 1]} : vector<128x128xf32> to vector<32x32xf32>
    %cst_9 = arith.constant dense<0.000000e+00> : vector<32x32xf32>
    %20 = tpu.matmul %6, %19, %cst_9 {dimension_numbers = #tpu.dot_dimension_numbers<[1], [0], [0], [1], [0, 0, 1, 1], [], []>} : vector<32x32xf32>, vector<32x32xf32>, vector<32x32xf32> -> vector<32x32xf32>
    %21 = vector.extract_strided_slice %3 {offsets = [24, 0], sizes = [8, 32], strides = [1, 1]} : vector<32x128xf32> to vector<8x32xf32>
    %cst_10 = arith.constant dense<0.000000e+00> : vector<8x32xf32>
    %22 = tpu.matmul %21, %20, %cst_10 {dimension_numbers = #tpu.dot_dimension_numbers<[1], [0], [0], [1], [0, 0, 1, 1], [], []>} : vector<8x32xf32>, vector<32x32xf32>, vector<8x32xf32> -> vector<8x32xf32>
    %23 = tpu.concatenate %10, %14, %18, %22 in 0 : vector<8x32xf32>, vector<8x32xf32>, vector<8x32xf32>, vector<8x32xf32> -> vector<32x32xf32>
    %24 = vector.extract_strided_slice %0 {offsets = [0, 32], sizes = [32, 32], strides = [1, 1]} : vector<32x128xf32> to vector<32x32xf32>
    %25 = tpu.transpose %24, [1, 0] : vector<32x32xf32> -> vector<32x32xf32>
    %26 = vector.extract_strided_slice %4 {offsets = [0, 32], sizes = [32, 32], strides = [1, 1]} : vector<128x128xf32> to vector<32x32xf32>
    %cst_11 = arith.constant dense<0.000000e+00> : vector<32x32xf32>
    %27 = tpu.matmul %25, %26, %cst_11 {dimension_numbers = #tpu.dot_dimension_numbers<[1], [0], [0], [1], [0, 0, 1, 1], [], []>} : vector<32x32xf32>, vector<32x32xf32>, vector<32x32xf32> -> vector<32x32xf32>
    %28 = vector.extract_strided_slice %3 {offsets = [0, 32], sizes = [8, 32], strides = [1, 1]} : vector<32x128xf32> to vector<8x32xf32>
    %cst_12 = arith.constant dense<0.000000e+00> : vector<8x32xf32>
    %29 = tpu.matmul %28, %27, %cst_12 {dimension_numbers = #tpu.dot_dimension_numbers<[1], [0], [0], [1], [0, 0, 1, 1], [], []>} : vector<8x32xf32>, vector<32x32xf32>, vector<8x32xf32> -> vector<8x32xf32>
    %30 = vector.extract_strided_slice %4 {offsets = [32, 32], sizes = [32, 32], strides = [1, 1]} : vector<128x128xf32> to vector<32x32xf32>
    %cst_13 = arith.constant dense<0.000000e+00> : vector<32x32xf32>
    %31 = tpu.matmul %25, %30, %cst_13 {dimension_numbers = #tpu.dot_dimension_numbers<[1], [0], [0], [1], [0, 0, 1, 1], [], []>} : vector<32x32xf32>, vector<32x32xf32>, vector<32x32xf32> -> vector<32x32xf32>
    %32 = vector.extract_strided_slice %3 {offsets = [8, 32], sizes = [8, 32], strides = [1, 1]} : vector<32x128xf32> to vector<8x32xf32>
    %cst_14 = arith.constant dense<0.000000e+00> : vector<8x32xf32>
    %33 = tpu.matmul %32, %31, %cst_14 {dimension_numbers = #tpu.dot_dimension_numbers<[1], [0], [0], [1], [0, 0, 1, 1], [], []>} : vector<8x32xf32>, vector<32x32xf32>, vector<8x32xf32> -> vector<8x32xf32>
    %34 = vector.extract_strided_slice %4 {offsets = [64, 32], sizes = [32, 32], strides = [1, 1]} : vector<128x128xf32> to vector<32x32xf32>
    %cst_15 = arith.constant dense<0.000000e+00> : vector<32x32xf32>
    %35 = tpu.matmul %25, %34, %cst_15 {dimension_numbers = #tpu.dot_dimension_numbers<[1], [0], [0], [1], [0, 0, 1, 1], [], []>} : vector<32x32xf32>, vector<32x32xf32>, vector<32x32xf32> -> vector<32x32xf32>
    %36 = vector.extract_strided_slice %3 {offsets = [16, 32], sizes = [8, 32], strides = [1, 1]} : vector<32x128xf32> to vector<8x32xf32>
    %cst_16 = arith.constant dense<0.000000e+00> : vector<8x32xf32>
    %37 = tpu.matmul %36, %35, %cst_16 {dimension_numbers = #tpu.dot_dimension_numbers<[1], [0], [0], [1], [0, 0, 1, 1], [], []>} : vector<8x32xf32>, vector<32x32xf32>, vector<8x32xf32> -> vector<8x32xf32>
    %38 = vector.extract_strided_slice %4 {offsets = [96, 32], sizes = [32, 32], strides = [1, 1]} : vector<128x128xf32> to vector<32x32xf32>
    %cst_17 = arith.constant dense<0.000000e+00> : vector<32x32xf32>
    %39 = tpu.matmul %25, %38, %cst_17 {dimension_numbers = #tpu.dot_dimension_numbers<[1], [0], [0], [1], [0, 0, 1, 1], [], []>} : vector<32x32xf32>, vector<32x32xf32>, vector<32x32xf32> -> vector<32x32xf32>
    %40 = vector.extract_strided_slice %3 {offsets = [24, 32], sizes = [8, 32], strides = [1, 1]} : vector<32x128xf32> to vector<8x32xf32>
    %cst_18 = arith.constant dense<0.000000e+00> : vector<8x32xf32>
    %41 = tpu.matmul %40, %39, %cst_18 {dimension_numbers = #tpu.dot_dimension_numbers<[1], [0], [0], [1], [0, 0, 1, 1], [], []>} : vector<8x32xf32>, vector<32x32xf32>, vector<8x32xf32> -> vector<8x32xf32>
    %42 = tpu.concatenate %29, %33, %37, %41 in 0 : vector<8x32xf32>, vector<8x32xf32>, vector<8x32xf32>, vector<8x32xf32> -> vector<32x32xf32>
    %43 = vector.extract_strided_slice %0 {offsets = [0, 64], sizes = [32, 32], strides = [1, 1]} : vector<32x128xf32> to vector<32x32xf32>
    %44 = tpu.transpose %43, [1, 0] : vector<32x32xf32> -> vector<32x32xf32>
    %45 = vector.extract_strided_slice %4 {offsets = [0, 64], sizes = [32, 32], strides = [1, 1]} : vector<128x128xf32> to vector<32x32xf32>
    %cst_19 = arith.constant dense<0.000000e+00> : vector<32x32xf32>
    %46 = tpu.matmul %44, %45, %cst_19 {dimension_numbers = #tpu.dot_dimension_numbers<[1], [0], [0], [1], [0, 0, 1, 1], [], []>} : vector<32x32xf32>, vector<32x32xf32>, vector<32x32xf32> -> vector<32x32xf32>
    %47 = vector.extract_strided_slice %3 {offsets = [0, 64], sizes = [8, 32], strides = [1, 1]} : vector<32x128xf32> to vector<8x32xf32>
    %cst_20 = arith.constant dense<0.000000e+00> : vector<8x32xf32>
    %48 = tpu.matmul %47, %46, %cst_20 {dimension_numbers = #tpu.dot_dimension_numbers<[1], [0], [0], [1], [0, 0, 1, 1], [], []>} : vector<8x32xf32>, vector<32x32xf32>, vector<8x32xf32> -> vector<8x32xf32>
    %49 = vector.extract_strided_slice %4 {offsets = [32, 64], sizes = [32, 32], strides = [1, 1]} : vector<128x128xf32> to vector<32x32xf32>
    %cst_21 = arith.constant dense<0.000000e+00> : vector<32x32xf32>
    %50 = tpu.matmul %44, %49, %cst_21 {dimension_numbers = #tpu.dot_dimension_numbers<[1], [0], [0], [1], [0, 0, 1, 1], [], []>} : vector<32x32xf32>, vector<32x32xf32>, vector<32x32xf32> -> vector<32x32xf32>
    %51 = vector.extract_strided_slice %3 {offsets = [8, 64], sizes = [8, 32], strides = [1, 1]} : vector<32x128xf32> to vector<8x32xf32>
    %cst_22 = arith.constant dense<0.000000e+00> : vector<8x32xf32>
    %52 = tpu.matmul %51, %50, %cst_22 {dimension_numbers = #tpu.dot_dimension_numbers<[1], [0], [0], [1], [0, 0, 1, 1], [], []>} : vector<8x32xf32>, vector<32x32xf32>, vector<8x32xf32> -> vector<8x32xf32>
    %53 = vector.extract_strided_slice %4 {offsets = [64, 64], sizes = [32, 32], strides = [1, 1]} : vector<128x128xf32> to vector<32x32xf32>
    %cst_23 = arith.constant dense<0.000000e+00> : vector<32x32xf32>
    %54 = tpu.matmul %44, %53, %cst_23 {dimension_numbers = #tpu.dot_dimension_numbers<[1], [0], [0], [1], [0, 0, 1, 1], [], []>} : vector<32x32xf32>, vector<32x32xf32>, vector<32x32xf32> -> vector<32x32xf32>
    %55 = vector.extract_strided_slice %3 {offsets = [16, 64], sizes = [8, 32], strides = [1, 1]} : vector<32x128xf32> to vector<8x32xf32>
    %cst_24 = arith.constant dense<0.000000e+00> : vector<8x32xf32>
    %56 = tpu.matmul %55, %54, %cst_24 {dimension_numbers = #tpu.dot_dimension_numbers<[1], [0], [0], [1], [0, 0, 1, 1], [], []>} : vector<8x32xf32>, vector<32x32xf32>, vector<8x32xf32> -> vector<8x32xf32>
    %57 = vector.extract_strided_slice %4 {offsets = [96, 64], sizes = [32, 32], strides = [1, 1]} : vector<128x128xf32> to vector<32x32xf32>
    %cst_25 = arith.constant dense<0.000000e+00> : vector<32x32xf32>
    %58 = tpu.matmul %44, %57, %cst_25 {dimension_numbers = #tpu.dot_dimension_numbers<[1], [0], [0], [1], [0, 0, 1, 1], [], []>} : vector<32x32xf32>, vector<32x32xf32>, vector<32x32xf32> -> vector<32x32xf32>
    %59 = vector.extract_strided_slice %3 {offsets = [24, 64], sizes = [8, 32], strides = [1, 1]} : vector<32x128xf32> to vector<8x32xf32>
    %cst_26 = arith.constant dense<0.000000e+00> : vector<8x32xf32>
    %60 = tpu.matmul %59, %58, %cst_26 {dimension_numbers = #tpu.dot_dimension_numbers<[1], [0], [0], [1], [0, 0, 1, 1], [], []>} : vector<8x32xf32>, vector<32x32xf32>, vector<8x32xf32> -> vector<8x32xf32>
    %61 = tpu.concatenate %48, %52, %56, %60 in 0 : vector<8x32xf32>, vector<8x32xf32>, vector<8x32xf32>, vector<8x32xf32> -> vector<32x32xf32>
    %62 = vector.extract_strided_slice %0 {offsets = [0, 96], sizes = [32, 32], strides = [1, 1]} : vector<32x128xf32> to vector<32x32xf32>
    %63 = tpu.transpose %62, [1, 0] : vector<32x32xf32> -> vector<32x32xf32>
    %64 = vector.extract_strided_slice %4 {offsets = [0, 96], sizes = [32, 32], strides = [1, 1]} : vector<128x128xf32> to vector<32x32xf32>
    %cst_27 = arith.constant dense<0.000000e+00> : vector<32x32xf32>
    %65 = tpu.matmul %63, %64, %cst_27 {dimension_numbers = #tpu.dot_dimension_numbers<[1], [0], [0], [1], [0, 0, 1, 1], [], []>} : vector<32x32xf32>, vector<32x32xf32>, vector<32x32xf32> -> vector<32x32xf32>
    %66 = vector.extract_strided_slice %3 {offsets = [0, 96], sizes = [8, 32], strides = [1, 1]} : vector<32x128xf32> to vector<8x32xf32>
    %cst_28 = arith.constant dense<0.000000e+00> : vector<8x32xf32>
    %67 = tpu.matmul %66, %65, %cst_28 {dimension_numbers = #tpu.dot_dimension_numbers<[1], [0], [0], [1], [0, 0, 1, 1], [], []>} : vector<8x32xf32>, vector<32x32xf32>, vector<8x32xf32> -> vector<8x32xf32>
    %68 = vector.extract_strided_slice %4 {offsets = [32, 96], sizes = [32, 32], strides = [1, 1]} : vector<128x128xf32> to vector<32x32xf32>
    %cst_29 = arith.constant dense<0.000000e+00> : vector<32x32xf32>
    %69 = tpu.matmul %63, %68, %cst_29 {dimension_numbers = #tpu.dot_dimension_numbers<[1], [0], [0], [1], [0, 0, 1, 1], [], []>} : vector<32x32xf32>, vector<32x32xf32>, vector<32x32xf32> -> vector<32x32xf32>
    %70 = vector.extract_strided_slice %3 {offsets = [8, 96], sizes = [8, 32], strides = [1, 1]} : vector<32x128xf32> to vector<8x32xf32>
    %cst_30 = arith.constant dense<0.000000e+00> : vector<8x32xf32>
    %71 = tpu.matmul %70, %69, %cst_30 {dimension_numbers = #tpu.dot_dimension_numbers<[1], [0], [0], [1], [0, 0, 1, 1], [], []>} : vector<8x32xf32>, vector<32x32xf32>, vector<8x32xf32> -> vector<8x32xf32>
    %72 = vector.extract_strided_slice %4 {offsets = [64, 96], sizes = [32, 32], strides = [1, 1]} : vector<128x128xf32> to vector<32x32xf32>
    %cst_31 = arith.constant dense<0.000000e+00> : vector<32x32xf32>
    %73 = tpu.matmul %63, %72, %cst_31 {dimension_numbers = #tpu.dot_dimension_numbers<[1], [0], [0], [1], [0, 0, 1, 1], [], []>} : vector<32x32xf32>, vector<32x32xf32>, vector<32x32xf32> -> vector<32x32xf32>
    %74 = vector.extract_strided_slice %3 {offsets = [16, 96], sizes = [8, 32], strides = [1, 1]} : vector<32x128xf32> to vector<8x32xf32>
    %cst_32 = arith.constant dense<0.000000e+00> : vector<8x32xf32>
    %75 = tpu.matmul %74, %73, %cst_32 {dimension_numbers = #tpu.dot_dimension_numbers<[1], [0], [0], [1], [0, 0, 1, 1], [], []>} : vector<8x32xf32>, vector<32x32xf32>, vector<8x32xf32> -> vector<8x32xf32>
    %76 = vector.extract_strided_slice %4 {offsets = [96, 96], sizes = [32, 32], strides = [1, 1]} : vector<128x128xf32> to vector<32x32xf32>
    %cst_33 = arith.constant dense<0.000000e+00> : vector<32x32xf32>
    %77 = tpu.matmul %63, %76, %cst_33 {dimension_numbers = #tpu.dot_dimension_numbers<[1], [0], [0], [1], [0, 0, 1, 1], [], []>} : vector<32x32xf32>, vector<32x32xf32>, vector<32x32xf32> -> vector<32x32xf32>
    %78 = vector.extract_strided_slice %3 {offsets = [24, 96], sizes = [8, 32], strides = [1, 1]} : vector<32x128xf32> to vector<8x32xf32>
    %cst_34 = arith.constant dense<0.000000e+00> : vector<8x32xf32>
    %79 = tpu.matmul %78, %77, %cst_34 {dimension_numbers = #tpu.dot_dimension_numbers<[1], [0], [0], [1], [0, 0, 1, 1], [], []>} : vector<8x32xf32>, vector<32x32xf32>, vector<8x32xf32> -> vector<8x32xf32>
    %80 = tpu.concatenate %67, %71, %75, %79 in 0 : vector<8x32xf32>, vector<8x32xf32>, vector<8x32xf32>, vector<8x32xf32> -> vector<32x32xf32>
    %81 = tpu.concatenate %23, %42, %61, %80 in 1 : vector<32x32xf32>, vector<32x32xf32>, vector<32x32xf32>, vector<32x32xf32> -> vector<32x128xf32>
    %c0_35 = arith.constant 0 : index
    %c0_36 = arith.constant 0 : index
    %82 = vector.load %arg2[%c0_35, %c0_36] : memref<32x32xf32, #tpu.memory_space<vmem>>, vector<32x32xf32>
    %cst_37 = arith.constant dense<0.000000e+00> : vector<32x128xf32>
    %83 = tpu.matmul %82, %81, %cst_37 {dimension_numbers = #tpu.dot_dimension_numbers<[1], [0], [0], [1], [0, 0, 1, 1], [], []>} : vector<32x32xf32>, vector<32x128xf32>, vector<32x128xf32> -> vector<32x128xf32>
    %c0_38 = arith.constant 0 : index
    %c0_39 = arith.constant 0 : index
    %84 = vector.load %arg3[%c0_38, %c0_39] : memref<32x1xf32, #tpu.memory_space<vmem>>, vector<32x1xf32>
    %85 = vector.broadcast %84 : vector<32x1xf32> to vector<32x128xf32>
    %86 = arith.addf %83, %85 : vector<32x128xf32>
    %87 = arith.subf %86, %0 : vector<32x128xf32>
    %cst_40 = arith.constant dense<0.000000e+00> : vector<32xf32>
    %88 = vector.multi_reduction <add>, %87, %cst_40 [1] : vector<32x128xf32> to vector<32xf32>
    %89 = vector.shape_cast %88 : vector<32xf32> to vector<32x1xf32>
    %cst_41 = arith.constant 7.812500e-03 : f32
    %90 = vector.broadcast %cst_41 : f32 to vector<32x1xf32>
    %91 = arith.mulf %89, %90 : vector<32x1xf32>
    %92 = vector.broadcast %91 : vector<32x1xf32> to vector<32x128xf32>
    %93 = arith.subf %87, %92 : vector<32x128xf32>
    %94 = arith.mulf %93, %93 : vector<32x128xf32>
    %cst_42 = arith.constant dense<0.000000e+00> : vector<32xf32>
    %95 = vector.multi_reduction <add>, %94, %cst_42 [1] : vector<32x128xf32> to vector<32xf32>
    %96 = vector.shape_cast %95 : vector<32xf32> to vector<32x1xf32>
    %cst_43 = arith.constant 7.812500e-03 : f32
    %97 = vector.broadcast %cst_43 : f32 to vector<32x1xf32>
    %98 = arith.mulf %96, %97 : vector<32x1xf32>
    %cst_44 = arith.constant 9.99999974E-6 : f32
    %99 = vector.broadcast %cst_44 : f32 to vector<32x1xf32>
    %100 = arith.addf %98, %99 : vector<32x1xf32>
    %101 = math.rsqrt %100 : vector<32x1xf32>
    %c0_45 = arith.constant 0 : index
    %c0_46 = arith.constant 0 : index
    %102 = vector.load %arg4[%c0_45, %c0_46] : memref<32x1xf32, #tpu.memory_space<vmem>>, vector<32x1xf32>
    %103 = vector.broadcast %102 : vector<32x1xf32> to vector<32x128xf32>
    %104 = arith.mulf %103, %93 : vector<32x128xf32>
    %105 = vector.broadcast %101 : vector<32x1xf32> to vector<32x128xf32>
    %106 = arith.mulf %104, %105 : vector<32x128xf32>
    %c0_47 = arith.constant 0 : index
    %c0_48 = arith.constant 0 : index
    %107 = vector.load %arg5[%c0_47, %c0_48] : memref<32x1xf32, #tpu.memory_space<vmem>>, vector<32x1xf32>
    %108 = vector.broadcast %107 : vector<32x1xf32> to vector<32x128xf32>
    %109 = arith.addf %106, %108 : vector<32x128xf32>
    %cst_49 = arith.constant 0.000000e+00 : f32
    %110 = vector.broadcast %cst_49 : f32 to vector<32x128xf32>
    %111 = arith.maximumf %109, %110 : vector<32x128xf32>
    %112 = arith.addf %0, %111 : vector<32x128xf32>
    %c0_50 = arith.constant 0 : index
    %c0_51 = arith.constant 0 : index
    %113 = vector.load %arg6[%c0_50, %c0_51] : memref<32x128xf32, #tpu.memory_space<vmem>>, vector<32x128xf32>
    tpu.vector_store %arg6[%c0_50, %c0_51], %112 {strides = array<i32>} : memref<32x128xf32, #tpu.memory_space<vmem>>, vector<32x128xf32>,
    return
  }
}

</mosaic_0001>

<bundles_post_ra>
// kernel: tpu_custom_call.1
= control target key start
LH: loop header
LB: loop body
LE: loop exit
PB: predicated region body
PF: predicated region fallthrough
CT: control target
= control target key end

     0   :  { %s2018_s29 = smov 96   ;;  %s2657_s0 = inlined_call_operand.vmem [shape: f32[32,128], index: 0, kind: input, shape index: {}]   ;;  %s2658_s1 = inlined_call_operand.vmem [shape: f32[160,32], index: 1, kind: input, shape index: {}]   ;;  %s2659_s2 = inlined_call_operand.vmem [shape: f32[32,32], index: 2, kind: input, shape index: {}]   ;;  %s2660_s3 = inlined_call_operand.vmem [shape: f32[32,1], index: 3, kind: input, shape index: {}]   ;;  %s2661_s4 = inlined_call_operand.vmem [shape: f32[32,1], index: 4, kind: input, shape index: {}]   ;;  %s2662_s5 = inlined_call_operand.vmem [shape: f32[32,1], index: 5, kind: input, shape index: {}]   ;;  %s2663_s6 = inlined_call_operand.hbm [shape: f32[32,128], index: 6, kind: output, shape index: {}]  }
   0x1   :  { %v2063_v0 = vld [vmem:[%s2657_s0 + $0x18] sm:$0xff]  ;;  %v2068_v1 = vld [vmem:[%s2657_s0 + $0x10] sm:$0xff]  ;;  %v2074_v2 = vld [vmem:[%s2657_s0] sm:$0xff] }
   0x2   :  { %121 = vmatpush.msra.mxu0 %v2063_v0  ;;  %1811 = vmatpush.msra.mxu2 %v2063_v0  ;;  %v2080_v3 = vld [vmem:[%s2657_s0 + $0x8] sm:$0xff] }
   0x3   :  { %186 = vxpose.xlu0.b32.start [1/4] (short) (narrow) %v2074_v2, 32  ;;  %442 = vrot.lane.b32.xlu1 %v2074_v2, %s2018_s29 }
   0x4   :  { %122 = vmatpush.msra.mxu0 %v2068_v1  ;;  %1812 = vmatpush.msra.mxu2 %v2068_v1 }
   0x5   :  { %11 = vsyncpa [#allocation3], 0  ;;  %446 = vrot.lane.b32.xlu2 %v2068_v1, %s2018_s29  ;;  %v28_v4 = vld [vmem:[%s2658_s1] sm:$0xff]  ;;  %vm48_vm0 = vcmask 261120   ;;  %v29_v5 = vld [vmem:[%s2658_s1 + $0x8] sm:$0xff]  ;;  %s2020_s23 = smov 32  }
   0x6   :  { %123 = vmatpush.msra.mxu0 %v2080_v3  ;;  %1813 = vmatpush.msra.mxu2 %v2080_v3  ;;  %v30_v6 = vld [vmem:[%s2658_s1 + $0x10] sm:$0xff]  ;;  %v31_v7 = vld [vmem:[%s2658_s1 + $0x18] sm:$0xff]  ;;  %v32_v8 = vld [vmem:[%s2658_s1 + $0x20] sm:$0xff]  ;;  %vm1458_vm1 = vcmask 523264   ;;  %vm1463_vm2 = vcmask 785408   ;;  %s1695_s14 = sshll.u32 %s2663_s6, 4  ;;  %s1696_s14 = int_to_ptr.hbm [resolvable:$true] %s1695_s14 }
   0x7   :  { %v33_v9 = vld [vmem:[%s2658_s1 + $0x28] sm:$0xff]  ;;  %v34_v10 = vld [vmem:[%s2658_s1 + $0x30] sm:$0xff]  ;;  %v35_v11 = vld [vmem:[%s2658_s1 + $0x38] sm:$0xff]  ;;  %s2023_s15 = smov 128  }
   0x8   :  { %124 = vmatpush.msra.mxu0 %v2074_v2  ;;  %1814 = vmatpush.msra.mxu2 %v2074_v2  ;;  %v36_v12 = vld [vmem:[%s2658_s1 + $0x40] sm:$0xff]  ;;  %v37_v13 = vld [vmem:[%s2658_s1 + $0x48] sm:$0xff]  ;;  %v38_v14 = vld [vmem:[%s2658_s1 + $0x50] sm:$0xff] }
   0x9   :  { %1707 = vmatmul.msk.f32.vlgmr.msra.gmra.mxu0 %vm48_vm0, %v28_v4  ;;  %v39_v15 = vld [vmem:[%s2658_s1 + $0x58] sm:$0xff]  ;;  %v40_v16 = vld [vmem:[%s2658_s1 + $0x60] sm:$0xff]  ;;  %v41_v17 = vld [vmem:[%s2658_s1 + $0x68] sm:$0xff] }
   0xa   :  { %v47_v18 = vld [vmem:[%s2658_s1 + $0x98] sm:$0xff]  ;;  %v42_v19 = vld [vmem:[%s2658_s1 + $0x70] sm:$0xff]  ;;  %v44_v22 = vld [vmem:[%s2658_s1 + $0x80] sm:$0xff] }
   0xb   :  { %187 = vxpose.xlu0.b32.cont [2/4] (short) (narrow) %v2080_v3, 32  ;;  %444 = vrot.lane.b32.xlu1 %v2080_v3, %s2018_s29  ;;  %v43_v20 = vld [vmem:[%s2658_s1 + $0x78] sm:$0xff]  ;;  %v45_v24 = vld [vmem:[%s2658_s1 + $0x88] sm:$0xff]  ;;  %v46_v26 = vld [vmem:[%s2658_s1 + $0x90] sm:$0xff]  ;;  %s2019_s1 = smov 64  }
   0xc   :  { %1726 = vmatmul.msk.f32.vlgmr.msra.gmra.mxu2 %vm48_vm0, %v47_v18 }
   0xd   :  { %448 = vrot.lane.b32.xlu2 %v2063_v0, %s2018_s29 }
  0x11   :  { %1708 = vmatmul.msk.f32.gmra.mxu0 %vm48_vm0, %v29_v5 }
  0x13   :  { %188 = vxpose.xlu0.b32.cont [3/4] (short) (narrow) %v2068_v1, 32 }
  0x19   :  { %1709 = vmatmul.msk.f32.gmra.mxu0 %vm48_vm0, %v30_v6 }
  0x1b   :  { %189 = vxpose.xlu0.b32.end [4/4] (short) (narrow) %v2063_v0, 32 }
  0x21   :  { %1710 = vmatmul.msk.f32.gmra.mxu0 %vm48_vm0, %v31_v7 }
  0x29   :  { %1711 = vmatmul.msk.f32.gmra.mxu0 %vm48_vm0, %v32_v8 }
  0x31   :  { %1712 = vmatmul.msk.f32.gmra.mxu0 %vm48_vm0, %v33_v9 }
  0x39   :  { %1713 = vmatmul.msk.f32.gmra.mxu0 %vm48_vm0, %v34_v10 }
  0x41   :  { %1714 = vmatmul.msk.f32.gmra.mxu0 %vm48_vm0, %v35_v11 }
  0x49   :  { %1715 = vmatmul.msk.f32.gmra.mxu0 %vm48_vm0, %v36_v12 }
  0x51   :  { %1716 = vmatmul.msk.f32.gmra.mxu0 %vm48_vm0, %v37_v13 }
  0x59   :  { %1717 = vmatmul.msk.f32.gmra.mxu0 %vm48_vm0, %v38_v14 }
  0x5f   :  { %v447_v52 = vpop.permute.xlu2 %446 }
  0x61   :  { %1718 = vmatmul.msk.f32.gmra.mxu0 %vm48_vm0, %v39_v15 }
  0x67   :  { %v449_v55 = vpop.permute.xlu2 %448 }
  0x69   :  { %1719 = vmatmul.msk.f32.gmra.mxu0 %vm48_vm0, %v40_v16 }
  0x71   :  { %1720 = vmatmul.msk.f32.gmra.mxu0 %vm48_vm0, %v41_v17 }
  0x75   :  { %v443_v46 = vpop.permute.xlu1 %442 }
  0x79   :  { %1721 = vmatmul.msk.f32.gmra.mxu0 %vm48_vm0, %v42_v19 }
  0x7d   :  { %v445_v49 = vpop.permute.xlu1 %444 }
  0x81   :  { %1722 = vmatmul.msk.f32.gmra.mxu0 %vm48_vm0, %v43_v20 }
  0x86   :  { %v2168_v21 = vpop.f32.mrf.mxu0 }
  0x89   :  { %1723 = vmatmul.msk.f32.gmra.mxu0 %vm48_vm0, %v44_v22 }
  0x8e   :  { %v2174_v23 = vpop.f32.mrf.mxu0 }
  0x8f   :  { %v183_v47 = vpop.f32.mrf.mxu2 }
  0x91   :  { %1724 = vmatmul.msk.f32.gmra.mxu0 %vm48_vm0, %v45_v24 }
  0x96   :  { %v2180_v25 = vpop.f32.mrf.mxu0 }
  0x99   :  { %1725 = vmatmul.msk.f32.gmra.mxu0 %vm48_vm0, %v46_v26 }
  0x9e   :  { %v2186_v27 = vpop.f32.mrf.mxu0 }
  0xa6   :  { %v138_v28 = vpop.f32.mrf.mxu0 }
  0xa7   :  { %v2188_v30 = vpop.trf.xlu0 }
  0xae   :  { %v141_v29 = vpop.f32.mrf.mxu0 }
  0xaf   :  { %v2190_v31 = vpack.i.bf16 %v138_v28, %v141_v29  ;;  %v2194_v33 = vpop.trf.xlu0 }
  0xb1   :  { %1828 = vrot.lane.b32.xlu2 %v2190_v31, %s2018_s29 }
  0xb6   :  { %v144_v32 = vpop.f32.mrf.mxu0 }
  0xb7   :  { %v2202_v36 = vpop.trf.xlu0 }
  0xb9   :  { %543 = vrot.lane.b32.xlu2 %v2168_v21, %s2018_s29 }
  0xbe   :  { %v147_v34 = vpop.f32.mrf.mxu0 }
  0xbf   :  { %242 = vmatpush.msra.mxu1 %v147_v34  ;;  %1815 = vmatpush.msra.mxu3 %v147_v34  ;;  %v2198_v35 = vpack.i.bf16 %v144_v32, %v147_v34  ;;  %v2210_v38 = vpop.trf.xlu0 }
  0xc1   :  { %1833 = vrot.lane.b32.xlu1 %v2198_v35, %s2018_s29  ;;  %243 = vmatpush.msra.mxu1 %v144_v32 }
  0xc2   :  { %1816 = vmatpush.msra.mxu3 %v144_v32 }
  0xc3   :  { %244 = vmatpush.msra.mxu1 %v141_v29 }
  0xc4   :  { %1817 = vmatpush.msra.mxu3 %v141_v29 }
  0xc5   :  { %245 = vmatpush.msra.mxu1 %v138_v28 }
  0xc6   :  { %1818 = vmatpush.msra.mxu3 %v138_v28  ;;  %v2204_v37 = vpop.f32.mrf.mxu0  ;;  %1727 = vmatmul.msk.f32.vlgmr.msra.gmra.mxu1 %vm48_vm0, %v2188_v30 }
  0xc7   :  { %1729 = vmatmul.msk.f32.vlgmr.msra.gmra.mxu3 %vm48_vm0, %v2202_v36 }
  0xce   :  { %v2212_v39 = vpop.f32.mrf.mxu0  ;;  %1728 = vmatmul.msk.f32.gmra.mxu1 %vm48_vm0, %v2194_v33 }
  0xcf   :  { %1730 = vmatmul.msk.f32.gmra.mxu3 %vm48_vm0, %v2210_v38  ;;  %v1842_v40 = vpack.i.bf16 %v2204_v37, %v2212_v39 }
  0xd1   :  { %1843 = vrot.lane.b32.xlu2 %v1842_v40, %s2018_s29 }
  0xd6   :  { %v156_v41 = vpop.f32.mrf.mxu0 }
  0xd9   :  { %612 = vrot.lane.b32.xlu2 %v2174_v23, %s2018_s29 }
  0xde   :  { %v159_v42 = vpop.f32.mrf.mxu0 }
  0xdf   :  { %294 = vmatpush.msrb.mxu3 %v159_v42  ;;  %v2223_v43 = vpack.i.bf16 %v156_v41, %v159_v42 }
  0xe1   :  { %1838 = vrot.lane.b32.xlu0 %v2223_v43, %s2018_s29  ;;  %295 = vmatpush.msrb.mxu3 %v156_v41 }
  0xe3   :  { %296 = vmatpush.msrb.mxu3 %v2212_v39 }
  0xe5   :  { %297 = vmatpush.msrb.mxu3 %v2204_v37 }
  0xe6   :  { %v2229_v44 = vpop.f32.mrf.mxu0  ;;  %1732 = vmatmul.msk.f32.vlgmr.msrb.gmra.mxu3 %vm48_vm0, %v2188_v30 }
  0xe7   :  { %398 = vmatpush.msra.mxu3 %v183_v47 }
  0xe9   :  { %871 = vrot.lane.b32.xlu0 %v2168_v21, %s2019_s1 }
  0xee   :  { %v2235_v45 = vpop.f32.mrf.mxu0  ;;  %1733 = vmatmul.msk.f32.gmra.mxu3 %vm48_vm0, %v2194_v33 }
  0xef   :  { %v1852_v53 = vpack.i.bf16 %v2229_v44, %v2235_v45 }
  0xf1   :  { %1878 = vrot.lane.b32.xlu0 %v2223_v43, %s2019_s1 }
  0xf6   :  { %454 = vxpose.xlu1.b32.start [1/4] (short) (narrow) %v443_v46, 32  ;;  %v2241_v48 = vpop.f32.mrf.mxu0  ;;  %1734 = vmatmul.msk.f32.gmra.mxu3 %vm48_vm0, %v2202_v36 }
  0xf9   :  { %1883 = vrot.lane.b32.xlu0 %v1842_v40, %s2019_s1 }
  0xfe   :  { %455 = vxpose.xlu1.b32.cont [2/4] (short) (narrow) %v445_v49, 32  ;;  %v2246_v50 = vpop.f32.mrf.mxu0  ;;  %1735 = vmatmul.msk.f32.gmra.mxu3 %vm48_vm0, %v2210_v38 }
  0xff   :  { %v1847_v51 = vpack.i.bf16 %v2241_v48, %v2246_v50  ;;  %v1922_v61 = vpack.i.bf16 %v2212_v39, %v2246_v50 }
 0x101   :  { %936 = vrot.lane.b32.xlu0 %v2174_v23, %s2019_s1  ;;  %1848 = vrot.lane.b32.xlu2 %v1847_v51, %s2018_s29 }
 0x106   :  { %456 = vxpose.xlu1.b32.cont [3/4] (short) (narrow) %v447_v52, 32  ;;  %v174_v54 = vpop.f32.mrf.mxu0 }
 0x109   :  { %1888 = vrot.lane.b32.xlu0 %v1847_v51, %s2019_s1  ;;  %1853 = vrot.lane.b32.xlu2 %v1852_v53, %s2018_s29 }
 0x10b   :  { %v2283_v60 = vpop.permute.xlu2 %1828 }
 0x10c   :  { %v1830_v39 = vunpack.i.l.bf16 %v2283_v60  ;;  %v1831_v40 = vunpack.i.h.bf16 %v2283_v60 }
 0x10e   :  { %457 = vxpose.xlu1.b32.end [4/4] (short) (narrow) %v449_v55, 32  ;;  %v177_v56 = vpop.f32.mrf.mxu0 }
 0x10f   :  { %v1902_v59 = vpack.i.bf16 %v174_v54, %v177_v56 }
 0x111   :  { %1893 = vrot.lane.b32.xlu0 %v1852_v53, %s2019_s1  ;;  %681 = vrot.lane.b32.xlu2 %v2180_v25, %s2018_s29 }
 0x113   :  { %v2291_v62 = vpop.permute.xlu2 %543 }
 0x116   :  { %v180_v57 = vpop.f32.mrf.mxu0 }
 0x117   :  { %399 = vmatpush.msra.mxu3 %v180_v57  ;;  %v1857_v58 = vpack.i.bf16 %v180_v57, %v183_v47 }
 0x119   :  { %1001 = vrot.lane.b32.xlu0 %v2180_v25, %s2019_s1  ;;  %1858 = vrot.lane.b32.xlu2 %v1857_v58, %s2018_s29 }
 0x11a   :  { %400 = vmatpush.msra.mxu3 %v177_v56 }
 0x11c   :  { %401 = vmatpush.msra.mxu3 %v174_v54 }
 0x11d   :  { %1742 = vmatmul.msk.f32.vlgmr.msra.gmra.mxu3 %vm48_vm0, %v2188_v30 }
 0x121   :  { %1903 = vrot.lane.b32.xlu0 %v1902_v59, %s2019_s1  ;;  %1863 = vrot.lane.b32.xlu2 %v1902_v59, %s2018_s29 }
 0x125   :  { %1743 = vmatmul.msk.f32.gmra.mxu3 %vm48_vm0, %v2194_v33 }
 0x129   :  { %1094 = vrot.lane.b32.xlu0 %v2068_v1, %s2020_s23  ;;  %774 = vrot.lane.b32.xlu2 %v2074_v2, %s2019_s1 }
 0x12b   :  { %v2296_v63 = vpop.permute.xlu2 %1843 }
 0x12c   :  { %v1845_v47 = vunpack.i.l.bf16 %v2296_v63 }
 0x12d   :  { %1744 = vmatmul.msk.f32.gmra.mxu3 %vm48_vm0, %v2202_v36 }
 0x131   :  { %1066 = vrot.lane.b32.xlu0 %v2186_v27, %s2019_s1  ;;  %776 = vrot.lane.b32.xlu2 %v2080_v3, %s2019_s1 }
 0x133   :  { %v2305_v7 = vpop.permute.xlu2 %612  ;;  %v1834_v18 = vpop.permute.xlu1 %1833 }
 0x135   :  { %1745 = vmatmul.msk.f32.gmra.mxu3 %vm48_vm0, %v2210_v38 }
 0x139   :  { %1913 = vrot.lane.b32.xlu0 %v2190_v31, %s2020_s23  ;;  %780 = vrot.lane.b32.xlu2 %v2063_v0, %s2019_s1 }
 0x141   :  { %1923 = vrot.lane.b32.xlu0 %v1922_v61, %s2020_s23  ;;  %750 = vrot.lane.b32.xlu2 %v2186_v27, %s2018_s29 }
 0x143   :  { %v247_v5 = vpop.f32.mrf.mxu1 }
 0x149   :  { %1933 = vrot.lane.b32.xlu0 %v1852_v53, %s2020_s23  ;;  %1868 = vrot.lane.b32.xlu2 %v2198_v35, %s2019_s1 }
 0x14a   :  { %v253_v4 = vpop.f32.mrf.mxu3 }
 0x14b   :  { %v250_v8 = vpop.f32.mrf.mxu1 }
 0x151   :  { %1187 = vrot.lane.b32.xlu0 %v2168_v21, %s2020_s23  ;;  %1873 = vrot.lane.b32.xlu2 %v2190_v31, %s2019_s1 }
 0x152   :  { %v256_v6 = vpop.f32.mrf.mxu3 }
 0x153   :  { %274 = vmatpush.msrb.mxu2 %v256_v6 }
 0x155   :  { %275 = vmatpush.msrb.mxu2 %v253_v4 }
 0x157   :  { %276 = vmatpush.msrb.mxu2 %v250_v8 }
 0x159   :  { %277 = vmatpush.msrb.mxu2 %v247_v5  ;;  %1252 = vrot.lane.b32.xlu0 %v2174_v23, %s2020_s23 }
 0x15a   :  { %1731 = vmatmul.msk.f32.vlgmr.msrb.gmra.mxu2 %vm48_vm0, %v2168_v21 }
 0x15b   :  { %v2311_v9 = vpop.permute.xlu2 %1848 }
 0x15c   :  { %v1850_v54 = vunpack.i.l.bf16 %v2311_v9  ;;  %v1851_v55 = vunpack.i.h.bf16 %v2311_v9 }
 0x161   :  { %1317 = vrot.lane.b32.xlu0 %v2180_v25, %s2020_s23 }
 0x163   :  { %v2315_v10 = vpop.permute.xlu2 %1853 }
 0x164   :  { %v1855_v56 = vunpack.i.l.bf16 %v2315_v10  ;;  %v1856_v57 = vunpack.i.h.bf16 %v2315_v10 }
 0x168   :  { %778 = vrot.lane.b32.xlu1 %v2068_v1, %s2019_s1 }
 0x169   :  { %v299_v11 = vpop.f32.mrf.mxu3  ;;  %1938 = vrot.lane.b32.xlu0 %v1857_v58, %s2020_s23 }
 0x16b   :  { %v2320_v12 = vpop.permute.xlu2 %681 }
 0x170   :  { %1898 = vrot.lane.b32.xlu1 %v1857_v58, %s2019_s1 }
 0x171   :  { %v302_v13 = vpop.f32.mrf.mxu3  ;;  %1943 = vrot.lane.b32.xlu0 %v1902_v59, %s2020_s23 }
 0x173   :  { %v2324_v14 = vpop.permute.xlu2 %1858 }
 0x174   :  { %v1861_v4 = vunpack.i.h.bf16 %v2324_v14 }
 0x178   :  { %1092 = vrot.lane.b32.xlu1 %v2080_v3, %s2020_s23 }
 0x179   :  { %v305_v15 = vpop.f32.mrf.mxu3  ;;  %1382 = vrot.lane.b32.xlu0 %v2186_v27, %s2020_s23 }
 0x17b   :  { %v2330_v1 = vpop.permute.xlu2 %1863 }
 0x17c   :  { %v1865_v5 = vunpack.i.l.bf16 %v2330_v1  ;;  %v1866_v6 = vunpack.i.h.bf16 %v2330_v1 }
 0x180   :  { %1096 = vrot.lane.b32.xlu1 %v2063_v0, %s2020_s23  ;;  %v1927_v0 = vpack.i.bf16 %v2204_v37, %v2241_v48  ;;  %v1835_v37 = vunpack.i.l.bf16 %v1834_v18 }
 0x181   :  { %v308_v16 = vpop.f32.mrf.mxu3 }
 0x182   :  { %326 = vmatpush.msra.mxu2 %v308_v16 }
 0x183   :  { %v775_v17 = vpop.permute.xlu2 %774 }
 0x184   :  { %327 = vmatpush.msra.mxu2 %v305_v15  ;;  %786 = vxpose.xlu2.b32.start [1/4] (short) (narrow) %v775_v17, 32 }
 0x186   :  { %328 = vmatpush.msra.mxu2 %v302_v13 }
 0x188   :  { %329 = vmatpush.msra.mxu2 %v299_v11  ;;  %1908 = vrot.lane.b32.xlu1 %v2198_v35, %s2020_s23 }
 0x189   :  { %1736 = vmatmul.msk.f32.vlgmr.msra.gmra.mxu2 %vm48_vm0, %v2174_v23 }
 0x18a   :  { %346 = vmatpush.msrb.mxu2 %v2246_v50 }
 0x18b   :  { %v777_v3 = vpop.permute.xlu2 %776 }
 0x18c   :  { %347 = vmatpush.msrb.mxu2 %v2241_v48  ;;  %787 = vxpose.xlu2.b32.cont [2/4] (short) (narrow) %v777_v3, 32  ;;  %v1846_v48 = vunpack.i.h.bf16 %v2296_v63  ;;  %v1860_v63 = vunpack.i.l.bf16 %v2324_v14 }
 0x18e   :  { %348 = vmatpush.msrb.mxu2 %v2235_v45 }
 0x190   :  { %349 = vmatpush.msrb.mxu2 %v2229_v44  ;;  %1918 = vrot.lane.b32.xlu1 %v2223_v43, %s2020_s23 }
 0x191   :  { %1737 = vmatmul.msk.f32.vlgmr.msrb.gmra.mxu2 %vm48_vm0, %v2188_v30 }
 0x193   :  { %v781_v24 = vpop.permute.xlu2 %780 }
 0x198   :  { %1928 = vrot.lane.b32.xlu1 %v1927_v0, %s2020_s23 }
 0x199   :  { %1738 = vmatmul.msk.f32.gmra.mxu2 %vm48_vm0, %v2194_v33 }
 0x19a   :  { %v2355_v19 = vpop.trf.xlu1 }
 0x19b   :  { %v751_v9 = vpop.permute.xlu2 %750 }
 0x1a0   :  { %v403_v30 = vpop.f32.mrf.mxu3 }
 0x1a1   :  { %1739 = vmatmul.msk.f32.gmra.mxu2 %vm48_vm0, %v2202_v36 }
 0x1a2   :  { %v2357_v20 = vpop.trf.xlu1 }
 0x1a3   :  { %v1869_v11 = vpop.permute.xlu2 %1868 }
 0x1a4   :  { %v1870_v15 = vunpack.i.l.bf16 %v1869_v11  ;;  %v1871_v16 = vunpack.i.h.bf16 %v1869_v11 }
 0x1a8   :  { %v406_v32 = vpop.f32.mrf.mxu3 }
 0x1a9   :  { %1740 = vmatmul.msk.f32.gmra.mxu2 %vm48_vm0, %v2210_v38  ;;  %v1836_v38 = vunpack.i.h.bf16 %v1834_v18 }
 0x1aa   :  { %v2359_v21 = vpop.trf.xlu1 }
 0x1ab   :  { %v1874_v13 = vpop.permute.xlu2 %1873 }
 0x1ac   :  { %v1875_v17 = vunpack.i.l.bf16 %v1874_v13  ;;  %v1876_v3 = vunpack.i.h.bf16 %v1874_v13 }
 0x1b0   :  { %v409_v34 = vpop.f32.mrf.mxu3 }
 0x1b2   :  { %v2361_v22 = vpop.trf.xlu1 }
 0x1b8   :  { %v412_v36 = vpop.f32.mrf.mxu3 }
 0x1da   :  { %v779_v23 = vpop.permute.xlu1 %778 }
 0x1db   :  { %788 = vxpose.xlu2.b32.cont [3/4] (short) (narrow) %v779_v23, 32 }
 0x1dd   :  { %v2363_v26 = vpop.f32.mrf.mxu2 }
 0x1e3   :  { %789 = vxpose.xlu2.b32.end [4/4] (short) (narrow) %v781_v24, 32 }
 0x20c   :  { %v2365_v28 = vpop.f32.mrf.mxu2 }
 0x214   :  { %v351_v29 = vpop.f32.mrf.mxu2 }
 0x21c   :  { %v354_v31 = vpop.f32.mrf.mxu2 }
 0x224   :  { %v357_v33 = vpop.f32.mrf.mxu2 }
 0x22c   :  { %v360_v35 = vpop.f32.mrf.mxu2 }
 0x22d   :  { %378 = vmatpush.msrb.mxu1 %v360_v35 }
 0x22f   :  { %379 = vmatpush.msrb.mxu1 %v357_v33 }
 0x231   :  { %380 = vmatpush.msrb.mxu1 %v354_v31 }
 0x233   :  { %381 = vmatpush.msrb.mxu1 %v351_v29 }
 0x234   :  { %1741 = vmatmul.msk.f32.vlgmr.msrb.gmra.mxu1 %vm48_vm0, %v2180_v25 }
 0x235   :  { %430 = vmatpush.msra.mxu1 %v412_v36 }
 0x237   :  { %431 = vmatpush.msra.mxu1 %v409_v34 }
 0x239   :  { %432 = vmatpush.msra.mxu1 %v406_v32 }
 0x23b   :  { %433 = vmatpush.msra.mxu1 %v403_v30 }
 0x23c   :  { %1746 = vmatmul.msk.f32.vlgmr.msra.gmra.mxu1 %vm48_vm0, %v2186_v27 }
 0x23d   :  { %526 = vmatpush.msrb.mxu1 %v1835_v37 }
 0x23f   :  { %527 = vmatpush.msrb.mxu1 %v1836_v38 }
 0x241   :  { %528 = vmatpush.msrb.mxu1 %v1830_v39 }
 0x243   :  { %529 = vmatpush.msrb.mxu1 %v1831_v40 }
 0x244   :  { %1747 = vmatmul.msk.f32.vlgmr.msrb.gmra.mxu1 %vm48_vm0, %v2355_v19 }
 0x24c   :  { %1090 = vrot.lane.b32.xlu2 %v2074_v2, %s2020_s23  ;;  %1748 = vmatmul.msk.f32.gmra.mxu1 %vm48_vm0, %v2357_v20  ;;  %v1839_v2 = vpop.permute.xlu0 %1838 }
 0x24d   :  { %v1840_v45 = vunpack.i.l.bf16 %v1839_v2  ;;  %v1841_v46 = vunpack.i.h.bf16 %v1839_v2 }
 0x254   :  { %1749 = vmatmul.msk.f32.gmra.mxu1 %vm48_vm0, %v2359_v21  ;;  %v872_v24 = vpop.permute.xlu0 %871 }
 0x25c   :  { %1750 = vmatmul.msk.f32.gmra.mxu1 %vm48_vm0, %v2361_v22  ;;  %v1879_v30 = vpop.permute.xlu0 %1878 }
 0x25d   :  { %v1880_v32 = vunpack.i.l.bf16 %v1879_v30  ;;  %v1881_v34 = vunpack.i.h.bf16 %v1879_v30 }
 0x264   :  { %v2431_v1 = vpop.trf.xlu2  ;;  %v1884_v33 = vpop.permute.xlu0 %1883 }
 0x265   :  { %v1885_v35 = vunpack.i.l.bf16 %v1884_v33  ;;  %v1886_v36 = vunpack.i.h.bf16 %v1884_v33 }
 0x26c   :  { %v2436_v0 = vpop.trf.xlu2  ;;  %v937_v37 = vpop.permute.xlu0 %936 }
 0x274   :  { %v2440_v18 = vpop.trf.xlu2  ;;  %v1889_v38 = vpop.permute.xlu0 %1888 }
 0x27c   :  { %v1894_v39 = vpop.permute.xlu0 %1893 }
 0x284   :  { %v1002_v40 = vpop.permute.xlu0 %1001 }
 0x2b1   :  { %v2383_v25 = vpop.f32.mrf.mxu1 }
 0x2b9   :  { %v2385_v27 = vpop.f32.mrf.mxu1 }
 0x2c1   :  { %v531_v41 = vpop.f32.mrf.mxu1 }
 0x2c9   :  { %v534_v42 = vpop.f32.mrf.mxu1 }
 0x2d1   :  { %v537_v43 = vpop.f32.mrf.mxu1 }
 0x2d9   :  { %v540_v44 = vpop.f32.mrf.mxu1 }
 0x2da   :  { %559 = vmatpush.msra.mxu2 %v540_v44 }
 0x2dc   :  { %560 = vmatpush.msra.mxu2 %v537_v43  ;;  %v1904_v43 = vpop.permute.xlu0 %1903 }
 0x2de   :  { %561 = vmatpush.msra.mxu2 %v534_v42 }
 0x2e0   :  { %562 = vmatpush.msra.mxu2 %v531_v41  ;;  %v1899_v41 = vpop.permute.xlu1 %1898 }
 0x2e1   :  { %1751 = vmatmul.msk.f32.vlgmr.msra.gmra.mxu2 %vm48_vm0, %v2291_v62  ;;  %v1901_v13 = vunpack.i.h.bf16 %v1899_v41 }
 0x2e2   :  { %595 = vmatpush.msrb.mxu2 %v1840_v45 }
 0x2e4   :  { %596 = vmatpush.msrb.mxu2 %v1841_v46  ;;  %v1095_v46 = vpop.permute.xlu0 %1094 }
 0x2e6   :  { %597 = vmatpush.msrb.mxu2 %v1845_v47 }
 0x2e8   :  { %598 = vmatpush.msrb.mxu2 %v1846_v48  ;;  %v1093_v2 = vpop.permute.xlu1 %1092 }
 0x2e9   :  { %1752 = vmatmul.msk.f32.vlgmr.msrb.gmra.mxu2 %vm48_vm0, %v2355_v19 }
 0x2f0   :  { %v1097_v47 = vpop.permute.xlu1 %1096 }
 0x2f1   :  { %1753 = vmatmul.msk.f32.gmra.mxu2 %vm48_vm0, %v2357_v20 }
 0x2f9   :  { %1754 = vmatmul.msk.f32.gmra.mxu2 %vm48_vm0, %v2359_v21 }
 0x301   :  { %1755 = vmatmul.msk.f32.gmra.mxu2 %vm48_vm0, %v2361_v22 }
 0x364   :  { %v2399_v49 = vpop.f32.mrf.mxu2 }
 0x36c   :  { %v600_v50 = vpop.f32.mrf.mxu2 }
 0x374   :  { %v603_v51 = vpop.f32.mrf.mxu2 }
 0x37c   :  { %v606_v52 = vpop.f32.mrf.mxu2 }
 0x384   :  { %v609_v53 = vpop.f32.mrf.mxu2 }
 0x385   :  { %628 = vmatpush.msrb.mxu3 %v609_v53 }
 0x387   :  { %629 = vmatpush.msrb.mxu3 %v606_v52 }
 0x389   :  { %630 = vmatpush.msrb.mxu3 %v603_v51  ;;  %v2462_v51 = vpop.permute.xlu1 %1908 }
 0x38a   :  { %v1910_v30 = vunpack.i.l.bf16 %v2462_v51 }
 0x38b   :  { %631 = vmatpush.msrb.mxu3 %v600_v50  ;;  %v2460_v50 = vpop.permute.xlu0 %1066 }
 0x38c   :  { %1756 = vmatmul.msk.f32.vlgmr.msrb.gmra.mxu3 %vm48_vm0, %v2305_v7 }
 0x38d   :  { %664 = vmatpush.msra.mxu3 %v1850_v54  ;;  %v1890_v54 = vunpack.i.l.bf16 %v1889_v38 }
 0x38f   :  { %665 = vmatpush.msra.mxu3 %v1851_v55 }
 0x391   :  { %666 = vmatpush.msra.mxu3 %v1855_v56  ;;  %v1919_v55 = vpop.permute.xlu1 %1918  ;;  %v1891_v56 = vunpack.i.h.bf16 %v1889_v38 }
 0x393   :  { %667 = vmatpush.msra.mxu3 %v1856_v57  ;;  %v2464_v53 = vpop.permute.xlu0 %1913  ;;  %v1895_v57 = vunpack.i.l.bf16 %v1894_v39 }
 0x394   :  { %1757 = vmatmul.msk.f32.vlgmr.msra.gmra.mxu3 %vm48_vm0, %v2355_v19  ;;  %v1915_v33 = vunpack.i.l.bf16 %v2464_v53 }
 0x39c   :  { %1758 = vmatmul.msk.f32.gmra.mxu3 %vm48_vm0, %v2357_v20 }
 0x3a4   :  { %1759 = vmatmul.msk.f32.gmra.mxu3 %vm48_vm0, %v2359_v21 }
 0x3ac   :  { %1760 = vmatmul.msk.f32.gmra.mxu3 %vm48_vm0, %v2361_v22 }
 0x40f   :  { %v2415_v58 = vpop.f32.mrf.mxu3 }
 0x410   :  { %v1957_v38 = vpack.i.bf16 %v2399_v49, %v2415_v58 }
 0x417   :  { %v669_v59 = vpop.f32.mrf.mxu3 }
 0x41f   :  { %v672_v60 = vpop.f32.mrf.mxu3 }
 0x427   :  { %v675_v61 = vpop.f32.mrf.mxu3 }
 0x42f   :  { %v678_v62 = vpop.f32.mrf.mxu3 }
 0x430   :  { %697 = vmatpush.msra.mxu1 %v678_v62  ;;  %v1921_v62 = vunpack.i.h.bf16 %v1919_v55 }
 0x432   :  { %698 = vmatpush.msra.mxu1 %v675_v61  ;;  %v1924_v61 = vpop.permute.xlu0 %1923 }
 0x434   :  { %699 = vmatpush.msra.mxu1 %v672_v60  ;;  %v1920_v60 = vunpack.i.l.bf16 %v1919_v55 }
 0x436   :  { %700 = vmatpush.msra.mxu1 %v669_v59  ;;  %v1896_v59 = vunpack.i.h.bf16 %v1894_v39 }
 0x437   :  { %1761 = vmatmul.msk.f32.vlgmr.msra.gmra.mxu1 %vm48_vm0, %v2320_v12 }
 0x438   :  { %733 = vmatpush.msrb.mxu1 %v1860_v63  ;;  %v1929_v63 = vpop.permute.xlu1 %1928 }
 0x43a   :  { %734 = vmatpush.msrb.mxu1 %v1861_v4  ;;  %v1926_v4 = vunpack.i.h.bf16 %v1924_v61 }
 0x43c   :  { %735 = vmatpush.msrb.mxu1 %v1865_v5  ;;  %v1931_v5 = vunpack.i.h.bf16 %v1929_v63 }
 0x43e   :  { %736 = vmatpush.msrb.mxu1 %v1866_v6 }
 0x43f   :  { %1762 = vmatmul.msk.f32.vlgmr.msrb.gmra.mxu1 %vm48_vm0, %v2355_v19  ;;  %v2444_v19 = vpop.trf.xlu2 }
 0x447   :  { %1763 = vmatmul.msk.f32.gmra.mxu1 %vm48_vm0, %v2357_v20 }
 0x44f   :  { %1764 = vmatmul.msk.f32.gmra.mxu1 %vm48_vm0, %v2359_v21 }
 0x457   :  { %1765 = vmatmul.msk.f32.gmra.mxu1 %vm48_vm0, %v2361_v22 }
 0x4b4   :  { %v702_v7 = vpop.f32.mrf.mxu1 }
 0x4bc   :  { %v738_v8 = vpop.f32.mrf.mxu1 }
 0x4c4   :  { %v741_v10 = vpop.f32.mrf.mxu1 }
 0x4cc   :  { %v744_v12 = vpop.f32.mrf.mxu1 }
 0x4d4   :  { %v747_v14 = vpop.f32.mrf.mxu1 }
 0x4d5   :  { %766 = vmatpush.msra.mxu2 %v747_v14  ;;  %v1905_v14 = vunpack.i.l.bf16 %v1904_v43 }
 0x4d7   :  { %767 = vmatpush.msra.mxu2 %v744_v12  ;;  %v1900_v12 = vunpack.i.l.bf16 %v1899_v41 }
 0x4d9   :  { %768 = vmatpush.msra.mxu2 %v741_v10 }
 0x4db   :  { %769 = vmatpush.msra.mxu2 %v738_v8 }
 0x4dc   :  { %1766 = vmatmul.msk.f32.vlgmr.msra.gmra.mxu2 %vm48_vm0, %v751_v9  ;;  %v1091_v9 = vpop.permute.xlu2 %1090 }
 0x4dd   :  { %854 = vmatpush.msrb.mxu2 %v1870_v15  ;;  %1102 = vxpose.xlu1.b32.start [1/4] (short) (narrow) %v1091_v9, 32  ;;  %v1906_v15 = vunpack.i.h.bf16 %v1904_v43 }
 0x4df   :  { %855 = vmatpush.msrb.mxu2 %v1871_v16  ;;  %v1925_v16 = vunpack.i.l.bf16 %v1924_v61 }
 0x4e1   :  { %856 = vmatpush.msrb.mxu2 %v1875_v17  ;;  %v1930_v17 = vunpack.i.l.bf16 %v1929_v63 }
 0x4e3   :  { %857 = vmatpush.msrb.mxu2 %v1876_v3  ;;  %v1934_v3 = vpop.permute.xlu0 %1933 }
 0x4e4   :  { %1767 = vmatmul.msk.f32.vlgmr.msrb.gmra.mxu2 %vm48_vm0, %v2431_v1 }
 0x4e5   :  { %1103 = vxpose.xlu1.b32.cont [2/4] (short) (narrow) %v1093_v2, 32 }
 0x4eb   :  { %v1188_v41 = vpop.permute.xlu0 %1187 }
 0x4ec   :  { %1768 = vmatmul.msk.f32.gmra.mxu2 %vm48_vm0, %v2436_v0 }
 0x4ed   :  { %1104 = vxpose.xlu1.b32.cont [3/4] (short) (narrow) %v1095_v46, 32 }
 0x4f4   :  { %1769 = vmatmul.msk.f32.gmra.mxu2 %vm48_vm0, %v2440_v18 }
 0x4f5   :  { %1105 = vxpose.xlu1.b32.end [4/4] (short) (narrow) %v1097_v47, 32 }
 0x4fc   :  { %1770 = vmatmul.msk.f32.gmra.mxu2 %vm48_vm0, %v2444_v19 }
 0x55f   :  { %v771_v20 = vpop.f32.mrf.mxu2 }
 0x560   :  { %v1947_v21 = vpack.i.bf16 %v702_v7, %v771_v20  ;;  %v1935_v20 = vunpack.i.l.bf16 %v1934_v3 }
 0x562   :  { %1948 = vrot.lane.b32.xlu0 %v1947_v21, %s2020_s23  ;;  %v1936_v21 = vunpack.i.h.bf16 %v1934_v3 }
 0x567   :  { %v859_v22 = vpop.f32.mrf.mxu2 }
 0x56f   :  { %v862_v23 = vpop.f32.mrf.mxu2 }
 0x577   :  { %v865_v29 = vpop.f32.mrf.mxu2 }
 0x57f   :  { %v868_v31 = vpop.f32.mrf.mxu2 }
 0x580   :  { %887 = vmatpush.msrb.mxu3 %v868_v31 }
 0x582   :  { %888 = vmatpush.msrb.mxu3 %v865_v29 }
 0x584   :  { %889 = vmatpush.msrb.mxu3 %v862_v23 }
 0x586   :  { %890 = vmatpush.msrb.mxu3 %v859_v22 }
 0x587   :  { %1771 = vmatmul.msk.f32.vlgmr.msrb.gmra.mxu3 %vm48_vm0, %v872_v24  ;;  %v2486_v24 = vpop.trf.xlu1 }
 0x588   :  { %919 = vmatpush.msra.mxu3 %v1880_v32  ;;  %v1911_v32 = vunpack.i.h.bf16 %v2462_v51 }
 0x58a   :  { %920 = vmatpush.msra.mxu3 %v1881_v34  ;;  %v1916_v34 = vunpack.i.h.bf16 %v2464_v53 }
 0x58c   :  { %921 = vmatpush.msra.mxu3 %v1885_v35 }
 0x58e   :  { %922 = vmatpush.msra.mxu3 %v1886_v36 }
 0x58f   :  { %1772 = vmatmul.msk.f32.vlgmr.msra.gmra.mxu3 %vm48_vm0, %v2431_v1 }
 0x597   :  { %1773 = vmatmul.msk.f32.gmra.mxu3 %vm48_vm0, %v2436_v0 }
 0x59f   :  { %1774 = vmatmul.msk.f32.gmra.mxu3 %vm48_vm0, %v2440_v18 }
 0x5a7   :  { %1775 = vmatmul.msk.f32.gmra.mxu3 %vm48_vm0, %v2444_v19 }
 0x60a   :  { %v2458_v42 = vpop.f32.mrf.mxu3 }
 0x612   :  { %v924_v44 = vpop.f32.mrf.mxu3 }
 0x61a   :  { %v927_v45 = vpop.f32.mrf.mxu3 }
 0x622   :  { %v930_v48 = vpop.f32.mrf.mxu3 }
 0x62a   :  { %v933_v52 = vpop.f32.mrf.mxu3 }
 0x62b   :  { %952 = vmatpush.msra.mxu1 %v933_v52 }
 0x62d   :  { %953 = vmatpush.msra.mxu1 %v930_v48 }
 0x62f   :  { %954 = vmatpush.msra.mxu1 %v927_v45  ;;  %v1253_v45 = vpop.permute.xlu0 %1252 }
 0x631   :  { %955 = vmatpush.msra.mxu1 %v924_v44 }
 0x632   :  { %1776 = vmatmul.msk.f32.vlgmr.msra.gmra.mxu1 %vm48_vm0, %v937_v37 }
 0x633   :  { %984 = vmatpush.msrb.mxu1 %v1890_v54 }
 0x635   :  { %985 = vmatpush.msrb.mxu1 %v1891_v56 }
 0x637   :  { %986 = vmatpush.msrb.mxu1 %v1895_v57 }
 0x639   :  { %987 = vmatpush.msrb.mxu1 %v1896_v59 }
 0x63a   :  { %1777 = vmatmul.msk.f32.vlgmr.msrb.gmra.mxu1 %vm48_vm0, %v2431_v1 }
 0x63b   :  { %1235 = vmatpush.msra.mxu1 %v1920_v60 }
 0x63d   :  { %1236 = vmatpush.msra.mxu1 %v1921_v62 }
 0x63f   :  { %1237 = vmatpush.msra.mxu1 %v1926_v4 }
 0x641   :  { %1238 = vmatpush.msra.mxu1 %v1931_v5 }
 0x642   :  { %1778 = vmatmul.msk.f32.gmra.mxu1 %vm48_vm0, %v2436_v0 }
 0x64a   :  { %1779 = vmatmul.msk.f32.gmra.mxu1 %vm48_vm0, %v2440_v18 }
 0x652   :  { %1780 = vmatmul.msk.f32.gmra.mxu1 %vm48_vm0, %v2444_v19 }
 0x65a   :  { %1792 = vmatmul.msk.f32.vlgmr.msra.gmra.mxu1 %vm48_vm0, %v2486_v24 }
 0x6af   :  { %v2475_v6 = vpop.f32.mrf.mxu1 }
 0x6b7   :  { %v989_v7 = vpop.f32.mrf.mxu1 }
 0x6bf   :  { %v992_v8 = vpop.f32.mrf.mxu1 }
 0x6c7   :  { %v995_v10 = vpop.f32.mrf.mxu1 }
 0x6cf   :  { %v998_v11 = vpop.f32.mrf.mxu1 }
 0x6d0   :  { %1017 = vmatpush.msra.mxu2 %v998_v11  ;;  %v1967_v11 = vpack.i.bf16 %v2458_v42, %v2475_v6 }
 0x6d2   :  { %1018 = vmatpush.msra.mxu2 %v995_v10 }
 0x6d4   :  { %1019 = vmatpush.msra.mxu2 %v992_v8 }
 0x6d6   :  { %1020 = vmatpush.msra.mxu2 %v989_v7 }
 0x6d7   :  { %1781 = vmatmul.msk.f32.vlgmr.msra.gmra.mxu2 %vm48_vm0, %v1002_v40  ;;  %v1240_v39 = vpop.f32.mrf.mxu1 }
 0x6d8   :  { %1049 = vmatpush.msrb.mxu2 %v1900_v12 }
 0x6da   :  { %1050 = vmatpush.msrb.mxu2 %v1901_v13  ;;  %v1472_v13 = vld [vmem:[%s2660_s3] sm:$0xff] }
 0x6dc   :  { %1051 = vmatpush.msrb.mxu2 %v1905_v14 }
 0x6de   :  { %1052 = vmatpush.msrb.mxu2 %v1906_v15  ;;  %v2021_v15 = vmov 0  }
 0x6df   :  { %1782 = vmatmul.msk.f32.vlgmr.msrb.gmra.mxu2 %vm48_vm0, %v2431_v1  ;;  %v2492_v1 = vpop.trf.xlu1  ;;  %1977 = vset.pattern.permute.xlu0 %v2021_v15 }
 0x6e0   :  { %1300 = vmatpush.msra.mxu2 %v1925_v16  ;;  %1793 = vmatmul.msk.f32.gmra.mxu1 %vm48_vm0, %v2492_v1 }
 0x6e1   :  { %1978 = vset.pattern.permute.xlu2 %v2021_v15  ;;  %1979 = vset.pattern.permute.xlu1 %v2021_v15 }
 0x6e2   :  { %1301 = vmatpush.msra.mxu2 %v1930_v17 }
 0x6e4   :  { %1302 = vmatpush.msra.mxu2 %v1935_v20 }
 0x6e6   :  { %1303 = vmatpush.msra.mxu2 %v1936_v21 }
 0x6e7   :  { %1783 = vmatmul.msk.f32.gmra.mxu2 %vm48_vm0, %v2436_v0 }
 0x6ef   :  { %1784 = vmatmul.msk.f32.gmra.mxu2 %vm48_vm0, %v2440_v18  ;;  %v2498_v18 = vpop.trf.xlu1 }
 0x6f0   :  { %1794 = vmatmul.msk.f32.gmra.mxu1 %vm48_vm0, %v2498_v18 }
 0x6f7   :  { %1785 = vmatmul.msk.f32.gmra.mxu2 %vm48_vm0, %v2444_v19  ;;  %v2505_v31 = vpop.trf.xlu1 }
 0x6f8   :  { %1795 = vmatmul.msk.f32.gmra.mxu1 %vm48_vm0, %v2505_v31 }
 0x6ff   :  { %1797 = vmatmul.msk.f32.vlgmr.msra.gmra.mxu2 %vm48_vm0, %v2486_v24 }
 0x707   :  { %1798 = vmatmul.msk.f32.gmra.mxu2 %vm48_vm0, %v2492_v1 }
 0x70f   :  { %1799 = vmatmul.msk.f32.gmra.mxu2 %vm48_vm0, %v2498_v18 }
 0x717   :  { %1800 = vmatmul.msk.f32.gmra.mxu2 %vm48_vm0, %v2505_v31 }
 0x75a   :  { %v1022_v22 = vpop.f32.mrf.mxu2 }
 0x75d   :  { %v1243_v44 = vpop.f32.mrf.mxu1 }
 0x762   :  { %v1054_v23 = vpop.f32.mrf.mxu2 }
 0x76a   :  { %v1057_v29 = vpop.f32.mrf.mxu2 }
 0x76d   :  { %v1246_v47 = vpop.f32.mrf.mxu1 }
 0x772   :  { %v1060_v0 = vpop.f32.mrf.mxu2 }
 0x775   :  { %v1249_v52 = vpop.f32.mrf.mxu1 }
 0x77a   :  { %v1063_v19 = vpop.f32.mrf.mxu2 }
 0x77b   :  { %1082 = vmatpush.msrb.mxu3 %v1063_v19 }
 0x77d   :  { %1083 = vmatpush.msrb.mxu3 %v1060_v0 }
 0x77f   :  { %1084 = vmatpush.msrb.mxu3 %v1057_v29 }
 0x781   :  { %1085 = vmatpush.msrb.mxu3 %v1054_v23 }
 0x782   :  { %1786 = vmatmul.msk.f32.vlgmr.msrb.gmra.mxu3 %vm48_vm0, %v2460_v50  ;;  %v1305_v43 = vpop.f32.mrf.mxu2  ;;  %v1318_v50 = vpop.permute.xlu0 %1317 }
 0x783   :  { %1170 = vmatpush.msra.mxu3 %v1910_v30 }
 0x785   :  { %1171 = vmatpush.msra.mxu3 %v1911_v32  ;;  %v1475_v32 = vld [vmem:[%s2660_s3 + $0x18] sm:$0xff] }
 0x787   :  { %1172 = vmatpush.msra.mxu3 %v1915_v33  ;;  %v1473_v33 = vld [vmem:[%s2660_s3 + $0x8] sm:$0xff] }
 0x789   :  { %1173 = vmatpush.msra.mxu3 %v1916_v34 }
 0x78a   :  { %1787 = vmatmul.msk.f32.vlgmr.msra.gmra.mxu3 %vm48_vm0, %v2486_v24  ;;  %v1308_v46 = vpop.f32.mrf.mxu2  ;;  %v1939_v49 = vpop.permute.xlu0 %1938 }
 0x78b   :  { %v1940_v53 = vunpack.i.l.bf16 %v1939_v49  ;;  %v1941_v54 = vunpack.i.h.bf16 %v1939_v49 }
 0x792   :  { %1788 = vmatmul.msk.f32.gmra.mxu3 %vm48_vm0, %v2492_v1  ;;  %v1311_v51 = vpop.f32.mrf.mxu2  ;;  %v1944_v55 = vpop.permute.xlu0 %1943 }
 0x793   :  { %v1945_v56 = vunpack.i.l.bf16 %v1944_v55  ;;  %v1946_v57 = vunpack.i.h.bf16 %v1944_v55  ;;  %v2604_v55 = vld [vmem:[%s2657_s0 + $0x8] sm:$0xff] }
 0x79a   :  { %1789 = vmatmul.msk.f32.gmra.mxu3 %vm48_vm0, %v2498_v18  ;;  %v1314_v58 = vpop.f32.mrf.mxu2  ;;  %v1383_v8 = vpop.permute.xlu0 %1382 }
 0x7a2   :  { %1790 = vmatmul.msk.f32.gmra.mxu3 %vm48_vm0, %v2505_v31  ;;  %v1949_v12 = vpop.permute.xlu0 %1948 }
 0x7a3   :  { %v1950_v16 = vunpack.i.l.bf16 %v1949_v12  ;;  %v1951_v3 = vunpack.i.h.bf16 %v1949_v12 }
 0x7a5   :  { %v1457_v42 = vsel %vm48_vm0, %v2385_v27, %v1950_v16 }
 0x805   :  { %v1087_v35 = vpop.f32.mrf.mxu3 }
 0x806   :  { %v1952_v36 = vpack.i.bf16 %v1022_v22, %v1087_v35 }
 0x808   :  { %1953 = vrot.lane.b32.xlu0 %v1952_v36, %s2019_s1 }
 0x80d   :  { %v1175_v37 = vpop.f32.mrf.mxu3 }
 0x810   :  { %1958 = vrot.lane.b32.xlu0 %v1957_v38, %s2020_s23 }
 0x815   :  { %v1178_v40 = vpop.f32.mrf.mxu3 }
 0x818   :  { %1478 = vperm.xlu0 %1977, %v1472_v13   ;;  %v1652_v13 = vld [vmem:[%s2662_s5 + $0x18] sm:$0xff] }
 0x81d   :  { %v1181_v2 = vpop.f32.mrf.mxu3 }
 0x820   :  { %1493 = vperm.xlu0 %1977, %v1475_v32  }
 0x825   :  { %v1184_v48 = vpop.f32.mrf.mxu3 }
 0x826   :  { %1203 = vmatpush.msrb.mxu0 %v1184_v48 }
 0x828   :  { %1204 = vmatpush.msrb.mxu0 %v1181_v2  ;;  %v1470_v2 = vld [vmem:[%s2659_s2 + $0x10] sm:$0xff] }
 0x82a   :  { %1205 = vmatpush.msrb.mxu0 %v1178_v40 }
 0x82c   :  { %1206 = vmatpush.msrb.mxu0 %v1175_v37 }
 0x82d   :  { %1791 = vmatmul.msk.f32.vlgmr.msrb.gmra.mxu0 %vm48_vm0, %v1188_v41 }
 0x82e   :  { %1268 = vmatpush.msra.mxu0 %v1249_v52  ;;  %v2598_v52 = vld [vmem:[%s2657_s0] sm:$0xff] }
 0x830   :  { %1269 = vmatpush.msra.mxu0 %v1246_v47 }
 0x832   :  { %1270 = vmatpush.msra.mxu0 %v1243_v44 }
 0x834   :  { %1271 = vmatpush.msra.mxu0 %v1240_v39 }
 0x835   :  { %1796 = vmatmul.msk.f32.vlgmr.msra.gmra.mxu0 %vm48_vm0, %v1253_v45  ;;  %v1471_v45 = vld [vmem:[%s2659_s2 + $0x18] sm:$0xff] }
 0x836   :  { %1333 = vmatpush.msrb.mxu0 %v1314_v58 }
 0x838   :  { %1334 = vmatpush.msrb.mxu0 %v1311_v51  ;;  %v1620_v51 = vld [vmem:[%s2661_s4 + $0x18] sm:$0xff] }
 0x83a   :  { %1335 = vmatpush.msrb.mxu0 %v1308_v46  ;;  %v1618_v46 = vld [vmem:[%s2661_s4 + $0x8] sm:$0xff] }
 0x83c   :  { %1336 = vmatpush.msrb.mxu0 %v1305_v43  ;;  %v1468_v43 = vld [vmem:[%s2659_s2] sm:$0xff] }
 0x83d   :  { %1801 = vmatmul.msk.f32.vlgmr.msrb.gmra.mxu0 %vm48_vm0, %v1318_v50 }
 0x83e   :  { %1365 = vmatpush.msra.mxu0 %v1940_v53 }
 0x840   :  { %1366 = vmatpush.msra.mxu0 %v1941_v54 }
 0x842   :  { %1367 = vmatpush.msra.mxu0 %v1945_v56 }
 0x844   :  { %1368 = vmatpush.msra.mxu0 %v1946_v57 }
 0x845   :  { %1802 = vmatmul.msk.f32.vlgmr.msra.gmra.mxu0 %vm48_vm0, %v2486_v24 }
 0x84d   :  { %1803 = vmatmul.msk.f32.gmra.mxu0 %vm48_vm0, %v2492_v1  ;;  %v1456_v1 = vsel %vm48_vm0, %v2383_v25, %v1951_v3 }
 0x855   :  { %1804 = vmatmul.msk.f32.gmra.mxu0 %vm48_vm0, %v2498_v18 }
 0x85d   :  { %1805 = vmatmul.msk.f32.gmra.mxu0 %vm48_vm0, %v2505_v31 }
 0x87a   :  { %v1954_v14 = vpop.permute.xlu0 %1953 }
 0x87b   :  { %v1955_v17 = vunpack.i.l.bf16 %v1954_v14  ;;  %v1956_v20 = vunpack.i.h.bf16 %v1954_v14 }
 0x87d   :  { %v1462_v23 = vsel %vm1458_vm1, %v1457_v42, %v1955_v17  ;;  %v1461_v0 = vsel %vm1458_vm1, %v1456_v1, %v1956_v20 }
 0x882   :  { %v1959_v24 = vpop.permute.xlu0 %1958 }
 0x883   :  { %v1961_v19 = vunpack.i.h.bf16 %v1959_v24  ;;  %v1960_v30 = vunpack.i.l.bf16 %v1959_v24 }
 0x885   :  { %v1455_v36 = vsel %vm48_vm0, %v2365_v28, %v1960_v30  ;;  %v1454_v37 = vsel %vm48_vm0, %v2363_v26, %v1961_v19  ;;  %v1474_v28 = vld [vmem:[%s2660_s3 + $0x10] sm:$0xff]  ;;  %v1469_v26 = vld [vmem:[%s2659_s2 + $0x8] sm:$0xff]  ;;  %s2024_s3 = smov 8  }
 0x886   :  { %v1651_v19 = vld [vmem:[%s2662_s5 + $0x10] sm:$0xff] }
 0x88a   :  { %v1479_v47 = vpop.permute.xlu0 %1478 }
 0x8aa   :  { %v1208_v59 = vpop.f32.mrf.mxu0 }
 0x8b2   :  { %v1273_v60 = vpop.f32.mrf.mxu0 }
 0x8b3   :  { %v1972_v61 = vpack.i.bf16 %v1208_v59, %v1273_v60 }
 0x8b5   :  { %1973 = vrot.lane.b32.xlu1 %v1972_v61, %s2018_s29  ;;  %v2610_v61 = vld [vmem:[%s2657_s0 + $0x10] sm:$0xff] }
 0x8ba   :  { %v1338_v62 = vpop.f32.mrf.mxu0 }
 0x8bd   :  { %1628 = vperm.xlu1 %1979, %v1618_v46  }
 0x8c2   :  { %v1370_v63 = vpop.f32.mrf.mxu0 }
 0x8c5   :  { %1638 = vperm.xlu1 %1979, %v1620_v51  }
 0x8ca   :  { %v1373_v4 = vpop.f32.mrf.mxu0 }
 0x8d2   :  { %v1376_v5 = vpop.f32.mrf.mxu0 }
 0x8da   :  { %v1379_v7 = vpop.f32.mrf.mxu0 }
 0x8db   :  { %1398 = vmatpush.msrb.mxu3 %v1379_v7  ;;  %v2616_v7 = vld [vmem:[%s2657_s0 + $0x18] sm:$0xff] }
 0x8dd   :  { %1399 = vmatpush.msrb.mxu3 %v1376_v5 }
 0x8df   :  { %1400 = vmatpush.msrb.mxu3 %v1373_v4 }
 0x8e1   :  { %1401 = vmatpush.msrb.mxu3 %v1370_v63  ;;  %v1494_v63 = vpop.permute.xlu0 %1493 }
 0x8e2   :  { %1806 = vmatmul.msk.f32.vlgmr.msrb.gmra.mxu3 %vm48_vm0, %v1383_v8 }
 0x927   :  { %v1974_v31 = vpop.permute.xlu1 %1973 }
 0x928   :  { %v1975_v35 = vunpack.i.l.bf16 %v1974_v31  ;;  %v1976_v40 = vunpack.i.h.bf16 %v1974_v31 }
 0x965   :  { %v1403_v9 = vpop.f32.mrf.mxu3 }
 0x966   :  { %v1962_v10 = vpack.i.bf16 %v1338_v62, %v1403_v9  ;;  %v1617_v9 = vld [vmem:[%s2661_s4] sm:$0xff] }
 0x968   :  { %1963 = vrot.lane.b32.xlu2 %v1962_v10, %s2018_s29  ;;  %v1619_v10 = vld [vmem:[%s2661_s4 + $0x10] sm:$0xff] }
 0x970   :  { %1968 = vrot.lane.b32.xlu2 %v1967_v11, %s2019_s1  ;;  %v1649_v11 = vld [vmem:[%s2662_s5] sm:$0xff] }
 0x971   :  { %1655 = vperm.xlu1 %1979, %v1649_v11  }
 0x978   :  { %1483 = vperm.xlu2 %1978, %v1473_v33  }
 0x979   :  { %1670 = vperm.xlu1 %1979, %v1652_v13  }
 0x980   :  { %1488 = vperm.xlu2 %1978, %v1474_v28  }
 0x9c2   :  { %v1964_v21 = vpop.permute.xlu2 %1963 }
 0x9c3   :  { %v1966_v6 = vunpack.i.h.bf16 %v1964_v21  ;;  %v1965_v22 = vunpack.i.l.bf16 %v1964_v21 }
 0x9c5   :  { %v1467_v29 = vsel %vm1463_vm2, %v1462_v23, %v1965_v22  ;;  %v1466_v18 = vsel %vm1463_vm2, %v1461_v0, %v1966_v6 }
 0x9c6   :  { %1520 = vmatpush.msrb.mxu1 %v1467_v29 }
 0x9c8   :  { %1521 = vmatpush.msrb.mxu1 %v1466_v18  ;;  %v1650_v18 = vld [vmem:[%s2662_s5 + $0x8] sm:$0xff]  ;;  %s2022_s5 = smov [#allocation2]  }
 0x9c9   :  { %s1693_s11 = sshll.u32 %s2022_s5, 4  ;;  %s1694_s11 = int_to_ptr.vmem [resolvable:$true] %s1693_s11 }
 0x9ca   :  { %v1969_v27 = vpop.permute.xlu2 %1968 }
 0x9cb   :  { %v1971_v34 = vunpack.i.h.bf16 %v1969_v27  ;;  %v1970_v25 = vunpack.i.l.bf16 %v1969_v27 }
 0x9cd   :  { %v1460_v38 = vsel %vm1458_vm1, %v1455_v36, %v1970_v25  ;;  %v1459_v39 = vsel %vm1458_vm1, %v1454_v37, %v1971_v34  ;;  %v1629_v34 = vpop.permute.xlu1 %1628 }
 0x9ce   :  { %v1465_v41 = vsel %vm1463_vm2, %v1460_v38, %v1975_v35  ;;  %v1464_v44 = vsel %vm1463_vm2, %v1459_v39, %v1976_v40 }
 0x9cf   :  { %1522 = vmatpush.msrb.mxu1 %v1465_v41 }
 0x9d1   :  { %1523 = vmatpush.msrb.mxu1 %v1464_v44 }
 0x9d2   :  { %1807 = vmatmul.msk.f32.vlgmr.msrb.gmra.mxu1 %vm48_vm0, %v1468_v43  ;;  %v1484_v58 = vpop.permute.xlu2 %1483 }
 0x9d5   :  { %v1639_v40 = vpop.permute.xlu1 %1638 }
 0x9da   :  { %1808 = vmatmul.msk.f32.gmra.mxu1 %vm48_vm0, %v1469_v26  ;;  %v1489_v57 = vpop.permute.xlu2 %1488 }
 0x9e2   :  { %1809 = vmatmul.msk.f32.gmra.mxu1 %vm48_vm0, %v1470_v2 }
 0x9ea   :  { %1810 = vmatmul.msk.f32.gmra.mxu1 %vm48_vm0, %v1471_v45 }
 0xa4f   :  { %v1525_v48 = vpop.f32.mrf.mxu1 }
 0xa50   :  { %v1526_v50 = vadd.f32 %v1525_v48, %v1479_v47 }
 0xa52   :  { %v1537_v49 = vsub.f32 %v1526_v50, %v2598_v52 }
 0xa54   :  { %1541 = vadd.xlane.f32.xlu2 %v1537_v49 }
 0xa57   :  { %v1528_v53 = vpop.f32.mrf.mxu1 }
 0xa58   :  { %v1529_v54 = vadd.f32 %v1528_v53, %v1484_v58  ;;  %v1656_v58 = vpop.permute.xlu1 %1655 }
 0xa5a   :  { %v1538_v56 = vsub.f32 %v1529_v54, %v2604_v55 }
 0xa5c   :  { %1543 = vadd.xlane.f32.xlu0 %v1538_v56 }
 0xa5f   :  { %v1531_v59 = vpop.f32.mrf.mxu1 }
 0xa60   :  { %v1532_v60 = vadd.f32 %v1531_v59, %v1489_v57 }
 0xa62   :  { %v1539_v62 = vsub.f32 %v1532_v60, %v2610_v61 }
 0xa64   :  { %1545 = vadd.xlane.f32.xlu2 %v1539_v62 }
 0xa67   :  { %v1534_v4 = vpop.f32.mrf.mxu1 }
 0xa68   :  { %v1535_v5 = vadd.f32 %v1534_v4, %v1494_v63 }
 0xa6a   :  { %v1540_v8 = vsub.f32 %v1535_v5, %v2616_v7 }
 0xa6c   :  { %1547 = vadd.xlane.f32.xlu0 %v1540_v8 }
 0xa7c   :  { %1623 = vperm.xlu2 %1978, %v1617_v9  }
 0xa80   :  { %1633 = vperm.xlu0 %1977, %v1619_v10  }
 0xac7   :  { %v1542_v12 = vpop.xlane.xlu2 %1541 }
 0xac8   :  { %v1549_v14 = vmul.f32 0.0078125, %v1542_v12 }
 0xaca   :  { %v1553_v15 = vsub.f32 %v1537_v49, %v1549_v14 }
 0xacc   :  { %v1557_v16 = vmul.f32 %v1553_v15, %v1553_v15 }
 0xace   :  { %1561 = vadd.xlane.f32.xlu2 %v1557_v16 }
 0xacf   :  { %v1544_v17 = vpop.xlane.xlu0 %1543 }
 0xad0   :  { %v1550_v3 = vmul.f32 0.0078125, %v1544_v17 }
 0xad2   :  { %v1554_v20 = vsub.f32 %v1538_v56, %v1550_v3 }
 0xad4   :  { %v1558_v21 = vmul.f32 %v1554_v20, %v1554_v20  ;;  %v1642_v5 = vmul.f32 %v1629_v34, %v1554_v20  ;;  %v1671_v34 = vpop.permute.xlu1 %1670 }
 0xad6   :  { %1563 = vadd.xlane.f32.xlu0 %v1558_v21 }
 0xad7   :  { %v1546_v42 = vpop.xlane.xlu2 %1545 }
 0xad8   :  { %v1551_v6 = vmul.f32 0.0078125, %v1546_v42 }
 0xada   :  { %v2631_v22 = vsub.f32 %v1539_v62, %v1551_v6 }
 0xadc   :  { %v1559_v23 = vmul.f32 %v2631_v22, %v2631_v22 }
 0xade   :  { %1565 = vadd.xlane.f32.xlu2 %v1559_v23 }
 0xadf   :  { %v1548_v24 = vpop.xlane.xlu0 %1547  ;;  %v1624_v30 = vpop.permute.xlu2 %1623 }
 0xae0   :  { %v1552_v29 = vmul.f32 0.0078125, %v1548_v24  ;;  %v1641_v47 = vmul.f32 %v1624_v30, %v1553_v15 }
 0xae2   :  { %v2635_v1 = vsub.f32 %v1540_v8, %v1552_v29 }
 0xae4   :  { %v1560_v0 = vmul.f32 %v2635_v1, %v2635_v1  ;;  %v1644_v30 = vmul.f32 %v1639_v40, %v2635_v1 }
 0xae6   :  { %1567 = vadd.xlane.f32.xlu0 %v1560_v0 }
 0xaf2   :  { %v2645_v31 = vpop.permute.xlu0 %1633 }
 0xaf3   :  { %v1643_v6 = vmul.f32 %v2645_v31, %v2631_v22 }
 0xaf6   :  { %1660 = vperm.xlu2 %1978, %v1650_v18  }
 0xafa   :  { %1665 = vperm.xlu0 %1977, %v1651_v19  }
 0xb41   :  { %v1562_v27 = vpop.xlane.xlu2 %1561 }
 0xb42   :  { %v1569_v32 = vmul.f32 0.0078125, %v1562_v27 }
 0xb44   :  { %v1573_v33 = vadd.f32 1e-05, %v1569_v32 }
 0xb46   :  { %1980 = vrsqrt.f32 %v1573_v33  ;;  %vm1583_vm4 = vweird.f32 %v1573_v33 }
 0xb49   :  { %v1564_v25 = vpop.xlane.xlu0 %1563 }
 0xb4a   :  { %v1570_v35 = vmul.f32 0.0078125, %v1564_v25 }
 0xb4c   :  { %v1981_v36 = vpop.eup %1980  ;;  %v1574_v37 = vadd.f32 1e-05, %v1570_v35 }
 0xb4d   :  { %v1578_v38 = vmul.f32 %v1981_v36, %v1573_v33  ;;  %vm1584_vm3 = vweird.f32 %v1981_v36 }
 0xb4e   :  { %1982 = vrsqrt.f32 %v1574_v37  ;;  %vm1585_vm5 = vmor %vm1583_vm4, %vm1584_vm3  ;;  %vm1593_vm7 = vweird.f32 %v1574_v37 }
 0xb4f   :  { %v1579_v39 = vmul.f32 %v1981_v36, %v1578_v38 }
 0xb51   :  { %v1580_v41 = vmul.f32 0.5, %v1579_v39  ;;  %v1566_v43 = vpop.xlane.xlu2 %1565 }
 0xb52   :  { %v1571_v44 = vmul.f32 0.0078125, %v1566_v43 }
 0xb53   :  { %v1581_v28 = vsub.f32 1.5, %v1580_v41 }
 0xb54   :  { %v1983_v26 = vpop.eup %1982  ;;  %v1575_v2 = vadd.f32 1e-05, %v1571_v44 }
 0xb55   :  { %v1588_v45 = vmul.f32 %v1983_v26, %v1574_v37  ;;  %v1582_v46 = vmul.f32 %v1981_v36, %v1581_v28  ;;  %vm1594_vm6 = vweird.f32 %v1983_v26 }
 0xb56   :  { %1984 = vrsqrt.f32 %v1575_v2  ;;  %vm1595_vm8 = vmor %vm1593_vm7, %vm1594_vm6  ;;  %vm1603_vm10 = vweird.f32 %v1575_v2 }
 0xb57   :  { %v1589_v48 = vmul.f32 %v1983_v26, %v1588_v45  ;;  %v1586_v50 = vsel %vm1585_vm5, %v1981_v36, %v1582_v46 }
 0xb58   :  { %v1645_v51 = vmul.f32 %v1641_v47, %v1586_v50 }
 0xb59   :  { %v1590_v49 = vmul.f32 0.5, %v1589_v48  ;;  %v1568_v53 = vpop.xlane.xlu0 %1567  ;;  %v1661_v13 = vpop.permute.xlu2 %1660 }
 0xb5a   :  { %v1673_v54 = vadd.f32 %v1656_v58, %v1645_v51  ;;  %v1572_v56 = vmul.f32 0.0078125, %v1568_v53 }
 0xb5b   :  { %v1591_v57 = vsub.f32 1.5, %v1590_v49 }
 0xb5c   :  { %v1985_v59 = vpop.eup %1984  ;;  %v1677_v60 = vmax.f32 %v1673_v54, 0.0  ;;  %v1576_v62 = vadd.f32 1e-05, %v1572_v56 }
 0xb5d   :  { %v1598_v63 = vmul.f32 %v1985_v59, %v1575_v2  ;;  %v1592_v4 = vmul.f32 %v1983_v26, %v1591_v57  ;;  %vm1604_vm9 = vweird.f32 %v1985_v59 }
 0xb5e   :  { %v1681_v8 = vadd.f32 %v2598_v52, %v1677_v60  ;;  %1986 = vrsqrt.f32 %v1576_v62  ;;  %vm1605_vm11 = vmor %vm1603_vm10, %vm1604_vm9  ;;  %vm1613_vm13 = vweird.f32 %v1576_v62 }
 0xb5f   :  { %v1599_v9 = vmul.f32 %v1985_v59, %v1598_v63  ;;  %v1596_v10 = vsel %vm1595_vm8, %v1983_v26, %v1592_v4 }
 0xb60   :  { %1685 = vst [vmem:[#allocation2] sm:$0xff] %v1681_v8  ;;  %v1646_v11 = vmul.f32 %v1642_v5, %v1596_v10 }
 0xb61   :  { %v1600_v12 = vmul.f32 0.5, %v1599_v9 }
 0xb62   :  { %v1674_v14 = vadd.f32 %v1661_v13, %v1646_v11 }
 0xb63   :  { %v1601_v15 = vsub.f32 1.5, %v1600_v12 }
 0xb64   :  { %v1987_v16 = vpop.eup %1986  ;;  %v1678_v17 = vmax.f32 %v1674_v14, 0.0 }
 0xb65   :  { %v1608_v3 = vmul.f32 %v1987_v16, %v1576_v62  ;;  %v1602_v21 = vmul.f32 %v1985_v59, %v1601_v15  ;;  %vm1614_vm12 = vweird.f32 %v1987_v16 }
 0xb66   :  { %v1682_v20 = vadd.f32 %v2604_v55, %v1678_v17  ;;  %vm1615_vm14 = vmor %vm1613_vm13, %vm1614_vm12 }
 0xb67   :  { %v1609_v42 = vmul.f32 %v1987_v16, %v1608_v3  ;;  %v1606_v52 = vsel %vm1605_vm11, %v1985_v59, %v1602_v21 }
 0xb68   :  { %1686 = vst [vmem:[#allocation2 + $0x8] sm:$0xff] %v1682_v20  ;;  %v1647_v29 = vmul.f32 %v1643_v6, %v1606_v52 }
 0xb69   :  { %v1610_v23 = vmul.f32 0.5, %v1609_v42 }
 0xb6b   :  { %v1611_v24 = vsub.f32 1.5, %v1610_v23 }
 0xb6c   :  { %v1666_v0 = vpop.permute.xlu0 %1665 }
 0xb6d   :  { %v1675_v18 = vadd.f32 %v1666_v0, %v1647_v29  ;;  %v1612_v19 = vmul.f32 %v1987_v16, %v1611_v24 }
 0xb6f   :  { %v1679_v27 = vmax.f32 %v1675_v18, 0.0  ;;  %v1616_v55 = vsel %vm1615_vm14, %v1987_v16, %v1612_v19 }
 0xb70   :  { %v1648_v32 = vmul.f32 %v1644_v30, %v1616_v55 }
 0xb71   :  { %v1683_v33 = vadd.f32 %v2610_v61, %v1679_v27 }
 0xb72   :  { %v1676_v25 = vadd.f32 %v1671_v34, %v1648_v32 }
 0xb73   :  { %1687 = vst [vmem:[#allocation2 + $0x10] sm:$0xff] %v1683_v33 }
 0xb74   :  { %v1680_v22 = vmax.f32 %v1676_v25, 0.0 }
 0xb76   :  { %v1684_v1 = vadd.f32 %v2616_v7, %v1680_v22 }
 0xb78   :  { %1688 = vst [vmem:[#allocation2 + $0x18] sm:$0xff] %v1684_v1 }
 0xb79   :  { %1701 = dma.vmem_to_hbm [thread:$0]  %s1694_s11, 512, %s1696_s14, [#allocation3], %s2023_s15, %s2023_s15, %s2024_s3  }
 0xb7a   :  { %2016 = dma.done.wait [#allocation3], 512  }
 0xb7b   :  { %2017 = vsyncadd [#allocation3], 4294966784 }
 0xb7c   :  { %1706 = vsyncpa [#allocation3], 1 }

</bundles_post_ra>
